<compile_context>
chip_gen: v6e
topology: v6e:2x2x1
jax: 0.10.0
libtpu: 0.0.40
codegen_flags: <defaults>
</compile_context>

<pallas_src>
import functools
import math

import jax
import jax.numpy as jnp
import numpy as np
from jax.experimental import pallas as pl
from jax.experimental.pallas import tpu as pltpu


# ----------------------------- host-side weight packing -----------------------------
# ConvTranspose2d(k=4, s=2, p=1): output index o = 2*i + k - 1.

# 2 output rows {2m, 2m+1} from the input-row window {m-1, m, m+1}:
#   out 2m   <- (win 0, ky 3), (win 1, ky 1)
#   out 2m+1 <- (win 1, ky 2), (win 2, ky 0)
_ROW_TAPS_PAIR = (((0, 3), (1, 1)), ((1, 2), (2, 0)))

# 4 output rows {4t..4t+3} from the input-row window {2t-1, 2t, 2t+1, 2t+2}:
_ROW_TAPS_QUAD = (((0, 3), (1, 1)), ((1, 2), (2, 0)),
                  ((1, 3), (2, 1)), ((2, 2), (3, 0)))


def _convt_row_toeplitz(w, w_in, row_taps, n_win):
    """Pack torch ConvTranspose2d(k=4,s=2,p=1) weight (Cin, Cout, 4, 4) into a
    Toeplitz matrix (n_win*w_in*Cin, n_out*2*w_in*Cout) mapping a lane-dense
    window of n_win input rows directly to n_out lane-dense output rows.
    Column (x) zero padding is folded in (pad lanes are simply dropped)."""
    w = np.asarray(w, np.float32)
    c_in, c_out = w.shape[0], w.shape[1]
    w_out = 2 * w_in
    n_out = len(row_taps)
    m = np.zeros((n_win * w_in * c_in, n_out * w_out * c_out), np.float32)
    for j, taps in enumerate(row_taps):
        for (dy, ky) in taps:
            for ox in range(w_out):
                for kx in range(4):
                    ix2 = ox + 1 - kx
                    if ix2 % 2 != 0:
                        continue
                    ix = ix2 // 2
                    if not (0 <= ix < w_in):
                        continue
                    r0 = dy * w_in * c_in + ix * c_in
                    c0 = j * w_out * c_out + ox * c_out
                    m[r0:r0 + c_in, c0:c0 + c_out] += w[:, :, ky, kx]
    return m


def _convt_full_matrix(w, h_in, w_in):
    """Full linear map of ConvTranspose2d(k=4,s=2,p=1) from a lane-dense
    (h_in, w_in, Cin) input to a lane-dense (2*h_in, 2*w_in, Cout) output."""
    w = np.asarray(w, np.float32)
    c_in, c_out = w.shape[0], w.shape[1]
    h_out, w_out = 2 * h_in, 2 * w_in
    m = np.zeros((h_in * w_in * c_in, h_out * w_out * c_out), np.float32)
    for iy in range(h_in):
        for ky in range(4):
            oy = 2 * iy + ky - 1
            if not (0 <= oy < h_out):
                continue
            for ix in range(w_in):
                for kx in range(4):
                    ox = 2 * ix + kx - 1
                    if not (0 <= ox < w_out):
                        continue
                    r0 = (iy * w_in + ix) * c_in
                    c0 = (oy * w_out + ox) * c_out
                    m[r0:r0 + c_in, c0:c0 + c_out] += w[:, :, ky, kx]
    return m


def prepare_decoder_params(params, compute_dtype=jnp.bfloat16):
    """One-time host-side repack of torch-layout params into the fused layout."""
    fc_w = np.asarray(params["fc_w"], np.float32)      # (F, latent), torch (out, in)
    fc_b = np.asarray(params["fc_b"], np.float32)
    w1, b1 = np.asarray(params["w1"], np.float32), np.asarray(params["b1"], np.float32)
    w2, b2 = np.asarray(params["w2"], np.float32), np.asarray(params["b2"], np.float32)
    w3, b3 = np.asarray(params["w3"], np.float32), np.asarray(params["b3"], np.float32)
    c0 = w1.shape[0]                                    # hc*4
    hc = c0 // 4
    c1 = w1.shape[1]                                    # hc*2
    c_img = w3.shape[1]

    # torch .view(B, c0, 4, 4) flat index f = ci*16 + iy*4 + ix  ->  lane-dense seed
    # order s = (iy*4 + ix)*c0 + ci.
    idx = np.empty(16 * c0, np.int64)
    p = 0
    for iy in range(4):
        for ix in range(4):
            for ci in range(c0):
                idx[p] = ci * 16 + iy * 4 + ix
                p += 1
    wfc = fc_w[idx, :]                                  # (F, latent), seed-ordered rows
    bfc = fc_b[idx]

    # Fold FC + permutation + ConvT layer 1 into one (latent, 8*8*c1) weight.
    m1 = _convt_full_matrix(w1, 4, 4)                   # (16*c0, 64*c1)
    w01 = wfc.T @ m1                                    # (latent, 64*c1)  (=1024 @ hc=8)
    b01 = bfc @ m1 + np.tile(b1, 64)                    # (64*c1,)

    w2t = _convt_row_toeplitz(w2, 8, _ROW_TAPS_PAIR, 3)   # (3*8*c1, 2*16*hc) = (384, 256)
    b2t = np.tile(b2, 2 * 16)
    w3t = _convt_row_toeplitz(w3, 16, _ROW_TAPS_QUAD, 4)  # (4*16*hc, 4*32*c_img) = (512, 384)
    b3t = np.tile(b3, 4 * 32)

    wd = lambda a: jnp.asarray(a, compute_dtype)        # MXU operands
    fd = lambda a: jnp.asarray(a, jnp.float32).reshape(1, -1)
    return dict(w01=wd(w01), b01=fd(b01),
                w2=wd(w2t), b2=fd(b2t),
                w3=wd(w3t), b3=fd(b3t),
                hc=hc, c_img=c_img)


# ----------------------------- fused Pallas kernel -----------------------------

def _decoder_kernel(z_ref, w01_ref, b01_ref, w2_ref, b2_ref, w3_ref, b3_ref,
                    o_ref, *, bt, hc, c_img, approx_sigmoid):
    f32 = jnp.float32
    cdt = w01_ref.dtype                                  # compute dtype (bf16 or f32)
    c1, c2 = 2 * hc, hc
    l1 = 8 * c1                                          # lanes per layer-1 row (128 @ hc=8)
    l2 = 16 * c2                                         # lanes per layer-2 row (128)
    l3 = 32 * c_img                                      # lanes per output row   (96)

    def mm(a, w_ref):
        return jnp.dot(a, w_ref[...], preferred_element_type=f32)

    # ---- fused FC + .view + ConvT1 (+bias) + ReLU: one matmul, N = 8*l1 ----
    z = z_ref[...].astype(cdt)                           # (bt, latent)
    h1 = mm(z, w01_ref) + b01_ref[...]                   # (bt, 8*l1)
    a1 = jnp.maximum(h1, 0.0).astype(cdt).reshape(bt, 8, l1)   # rows y=0..7, lane = x*c1+c

    # ---- ConvT2 + ReLU: one matmul (M = 8*bt, K = 3*l1, N = 2*l2) ----
    zr1 = jnp.zeros((bt, 1, l1), cdt)
    up1 = jnp.concatenate([zr1, a1[:, :-1, :]], axis=1)  # row m-1 (zero halo, per sample)
    dn1 = jnp.concatenate([a1[:, 1:, :], zr1], axis=1)   # row m+1
    lhs2 = jnp.concatenate([up1, a1, dn1], axis=2).reshape(bt * 8, 3 * l1)
    h2 = mm(lhs2, w2_ref) + b2_ref[...]                  # (8*bt, 2*l2): [row 2m | row 2m+1]
    a2 = jnp.maximum(h2, 0.0).astype(cdt).reshape(bt, 8, 2 * l2)   # pair-packed

    # ---- ConvT3 + sigmoid: one matmul (M = 8*bt, K = 4*l2, N = 4*l3) ----
    zr2 = jnp.zeros((bt, 1, 2 * l2), cdt)
    up2 = jnp.concatenate([zr2, a2[:, :-1, :]], axis=1)  # pair t-1
    dn2 = jnp.concatenate([a2[:, 1:, :], zr2], axis=1)   # pair t+1
    # window = [row 2t-1 | row 2t | row 2t+1 | row 2t+2], 128-aligned lane slices
    lhs3 = jnp.concatenate([up2[:, :, l2:], a2, dn2[:, :, :l2]],
                           axis=2).reshape(bt * 8, 4 * l2)
    h3 = mm(lhs3, w3_ref) + b3_ref[...]                  # (8*bt, 4*l3): rows 4t..4t+3

    # numerically stable sigmoid: exp(-|x|) in (0,1], denominator in (1,2]
    e = jnp.exp(-jnp.abs(h3))
    sig = jnp.where(h3 >= 0.0, 1.0, e) * pl.reciprocal(1.0 + e, approx=approx_sigmoid)
    o_ref[...] = sig.reshape(bt, 8, 4 * l3)              # lane-dense (384-wide) store


# ----------------------------- wrapper -----------------------------

def _pick_bt(batch):
    """Batch tile: sublane-aligned, M = 8*Bt <= 512, and >=2 grid steps when the
    batch allows it (so v7x's two TensorCores both get work)."""
    if batch <= 8:
        return batch
    half = -(-batch // 2)
    bt = -(-half // 8) * 8
    return min(64, bt)


@functools.partial(jax.jit, static_argnames=("hc", "c_img", "bt"))
def _decoder_forward_impl(z, w01, b01, w2, b2, w3, b3, *, hc, c_img, bt):
    B, latent = z.shape
    out_lanes = 4 * 32 * c_img
    n_steps = -(-B // bt)
    Bp = n_steps * bt
    if Bp != B:
        z = jnp.concatenate([z, jnp.zeros((Bp - B, latent), z.dtype)], axis=0)

    kernel = functools.partial(
        _decoder_kernel, bt=bt, hc=hc, c_img=c_img,
        approx_sigmoid=bool(w01.dtype == jnp.bfloat16))

    def _full(arr):
        n = arr.ndim
        return pl.BlockSpec(arr.shape, lambda b, n=n: (0,) * n)

    out = pl.pallas_call(
        kernel,
        out_shape=jax.ShapeDtypeStruct((Bp, 8, out_lanes), jnp.float32),
        grid=(n_steps,),
        in_specs=[pl.BlockSpec((bt, latent), lambda b: (b, 0))]
                + [_full(a) for a in (w01, b01, w2, b2, w3, b3)],
        out_specs=pl.BlockSpec((bt, 8, out_lanes), lambda b: (b, 0, 0)),
        compiler_params=pltpu.CompilerParams(
            dimension_semantics=("parallel",)),
    )(z, w01, b01, w2, b2, w3, b3)

    # out[b, t, j*l3 + x*c + c] is output pixel (row 4t+j, col x, chan c) -> NHWC directly
    y = out[:B].reshape(B, 32, 32, c_img)
    return y.transpose(0, 3, 1, 2)                       # NCHW


def decoder_forward(prep, z, bt=None):
    if bt is None:
        bt = _pick_bt(int(z.shape[0]))
    return _decoder_forward_impl(
        z, prep["w01"], prep["b01"], prep["w2"], prep["b2"], prep["w3"], prep["b3"],
        hc=prep["hc"], c_img=prep["c_img"], bt=int(bt))


# ----------------------------- reference (pure JAX) -----------------------------

def decoder_reference(params, z):
    h = z @ params["fc_w"].T + params["fc_b"]
    B = z.shape[0]
    x = h.reshape(B, -1, 4, 4)

    def ct(x, w, b):
        # transposed conv == dilated conv with flipped, IO-swapped kernel
        wf = jnp.flip(w, (2, 3)).transpose(1, 0, 2, 3)   # (Cout,Cin,4,4) OIHW
        y = jax.lax.conv_general_dilated(
            x, wf, window_strides=(1, 1), padding=((2, 2), (2, 2)),
            lhs_dilation=(2, 2), dimension_numbers=("NCHW", "OIHW", "NCHW"))
        return y + b.reshape(1, -1, 1, 1)

    x = jax.nn.relu(ct(x, params["w1"], params["b1"]))
    x = jax.nn.relu(ct(x, params["w2"], params["b2"]))
    x = jax.nn.sigmoid(ct(x, params["w3"], params["b3"]))
    return x


# ----------------------------- params (torch-equivalent init) -----------------------------

def _uniform(key, shape, bound):
    return jax.random.uniform(key, shape, jnp.float32, -bound, bound)


def init_decoder_params(key, latent_dim, image_channels, hidden_channel):
    hc = hidden_channel
    keys = jax.random.split(key, 8)
    F = hc * 4 * 4 * 4
    fb = 1.0 / math.sqrt(latent_dim)
    fc_w = _uniform(keys[0], (F, latent_dim), fb)        # torch Linear: (out, in)
    fc_b = _uniform(keys[1], (F,), fb)

    def convt(kw, kb, cin, cout):
        bound = 1.0 / math.sqrt(cin * 16)
        return (_uniform(kw, (cin, cout, 4, 4), bound),  # torch ConvT: (Cin,Cout,kH,kW)
                _uniform(kb, (cout,), bound))

    w1, b1 = convt(keys[2], keys[3], hc * 4, hc * 2)
    w2, b2 = convt(keys[4], keys[5], hc * 2, hc)
    w3, b3 = convt(keys[6], keys[7], hc, image_channels)
    return dict(fc_w=fc_w, fc_b=fc_b, w1=w1, b1=b1, w2=w2, b2=b2, w3=w3, b3=b3)


# ----------------------------- main -----------------------------

if __name__ == "__main__":
    latent_dim, image_channels, hidden_channel = 8, 3, 8
    key = jax.random.PRNGKey(0)
    pkey, zkey = jax.random.split(key)
    params = init_decoder_params(pkey, latent_dim, image_channels, hidden_channel)

    # small batch (single grid step)
    z2 = jax.random.normal(zkey, (2, latent_dim), jnp.float32)
    y_ref2 = decoder_reference(params, z2)

    # f32 path: validates the fused FC/Toeplitz construction tightly (exact reciprocal).
    prep_f32 = prepare_decoder_params(params, compute_dtype=jnp.float32)
    y_f32 = jax.block_until_ready(decoder_forward(prep_f32, z2))
    assert y_f32.shape == (2, image_channels, 32, 32), y_f32.shape
    err32 = float(jnp.max(jnp.abs(y_f32 - y_ref2)))
    assert err32 < 5e-4, f"f32 max abs error vs reference: {err32}"

    # bf16 fast path (MXU-native), f32 accumulation, approx-reciprocal stable sigmoid.
    prep_bf16 = prepare_decoder_params(params, compute_dtype=jnp.bfloat16)
    y_bf16 = jax.block_until_ready(decoder_forward(prep_bf16, z2))
    assert y_bf16.shape == (2, image_channels, 32, 32), y_bf16.shape
    err16 = float(jnp.max(jnp.abs(y_bf16 - y_ref2)))
    assert err16 < 3e-2, f"bf16 max abs error vs reference: {err16}"

    # larger batch: exercises batch tiling, padding (20 -> 32) and a 2-step grid.
    z20 = jax.random.normal(jax.random.PRNGKey(1), (20, latent_dim), jnp.float32)
    y_ref20 = decoder_reference(params, z20)
    y20 = jax.block_until_ready(decoder_forward(prep_bf16, z20))
    assert y20.shape == (20, image_channels, 32, 32), y20.shape
    err20 = float(jnp.max(jnp.abs(y20 - y_ref20)))
    assert err20 < 3e-2, f"bf16 batched max abs error vs reference: {err20}"

    print("KERNEL_OK")
</pallas_src>

<mosaic_0001>
module attributes {stable_mosaic.version = 11 : i64} {
  func.func @_decoder_kernel(%arg0: i32, %arg1: memref<2x8xf32, #tpu.memory_space<vmem>>, %arg2: memref<8x1024xf32, #tpu.memory_space<vmem>>, %arg3: memref<1x1024xf32, #tpu.memory_space<vmem>>, %arg4: memref<384x256xf32, #tpu.memory_space<vmem>>, %arg5: memref<1x256xf32, #tpu.memory_space<vmem>>, %arg6: memref<512x384xf32, #tpu.memory_space<vmem>>, %arg7: memref<1x384xf32, #tpu.memory_space<vmem>>, %arg8: memref<2x8x384xf32, #tpu.memory_space<vmem>>) attributes {dimension_semantics = [#tpu.dimension_semantics<parallel>], iteration_bounds = array<i64: 1>, scalar_prefetch = 0 : i64, scratch_operands = 0 : i64, tpu.core_type = #tpu.core_type<tc>, window_params = [{transform_indices = @transform_0, window_bounds = array<i64: 2, 8>}, {pipeline_mode = #tpu.pipeline_mode<synchronous>, transform_indices = @transform_1, window_bounds = array<i64: 8, 1024>}, {pipeline_mode = #tpu.pipeline_mode<synchronous>, transform_indices = @transform_2, window_bounds = array<i64: 1, 1024>}, {pipeline_mode = #tpu.pipeline_mode<synchronous>, transform_indices = @transform_3, window_bounds = array<i64: 384, 256>}, {pipeline_mode = #tpu.pipeline_mode<synchronous>, transform_indices = @transform_4, window_bounds = array<i64: 1, 256>}, {pipeline_mode = #tpu.pipeline_mode<synchronous>, transform_indices = @transform_5, window_bounds = array<i64: 512, 384>}, {pipeline_mode = #tpu.pipeline_mode<synchronous>, transform_indices = @transform_6, window_bounds = array<i64: 1, 384>}, {transform_indices = @transform_7, window_bounds = array<i64: 2, 8, 384>}]} {
    %c0 = arith.constant 0 : index
    %c0_0 = arith.constant 0 : index
    %0 = vector.load %arg1[%c0, %c0_0] : memref<2x8xf32, #tpu.memory_space<vmem>>, vector<2x8xf32>
    %c0_1 = arith.constant 0 : index
    %c0_2 = arith.constant 0 : index
    %1 = vector.load %arg2[%c0_1, %c0_2] : memref<8x1024xf32, #tpu.memory_space<vmem>>, vector<8x1024xf32>
    %cst = arith.constant dense<0.000000e+00> : vector<2x1024xf32>
    %2 = tpu.matmul %0, %1, %cst {dimension_numbers = #tpu.dot_dimension_numbers<[1], [0], [0], [1], [0, 0, 1, 1], [], []>} : vector<2x8xf32>, vector<8x1024xf32>, vector<2x1024xf32> -> vector<2x1024xf32>
    %c0_3 = arith.constant 0 : index
    %c0_4 = arith.constant 0 : index
    %3 = vector.load %arg3[%c0_3, %c0_4] : memref<1x1024xf32, #tpu.memory_space<vmem>>, vector<1x1024xf32>
    %4 = vector.broadcast %3 : vector<1x1024xf32> to vector<2x1024xf32>
    %5 = arith.addf %2, %4 : vector<2x1024xf32>
    %cst_5 = arith.constant 0.000000e+00 : f32
    %6 = vector.broadcast %cst_5 : f32 to vector<2x1024xf32>
    %7 = arith.maximumf %5, %6 : vector<2x1024xf32>
    %8 = vector.shape_cast %7 : vector<2x1024xf32> to vector<2x8x128xf32>
    %cst_6 = arith.constant 0.000000e+00 : f32
    %9 = vector.broadcast %cst_6 : f32 to vector<2x1x128xf32>
    %10 = vector.extract_strided_slice %8 {offsets = [0, 0, 0], sizes = [2, 7, 128], strides = [1, 1, 1]} : vector<2x8x128xf32> to vector<2x7x128xf32>
    %11 = tpu.concatenate %9, %10 in 1 : vector<2x1x128xf32>, vector<2x7x128xf32> -> vector<2x8x128xf32>
    %12 = vector.extract_strided_slice %8 {offsets = [0, 1, 0], sizes = [2, 7, 128], strides = [1, 1, 1]} : vector<2x8x128xf32> to vector<2x7x128xf32>
    %13 = tpu.concatenate %12, %9 in 1 : vector<2x7x128xf32>, vector<2x1x128xf32> -> vector<2x8x128xf32>
    %14 = tpu.concatenate %11, %8, %13 in 2 : vector<2x8x128xf32>, vector<2x8x128xf32>, vector<2x8x128xf32> -> vector<2x8x384xf32>
    %15 = vector.shape_cast %14 : vector<2x8x384xf32> to vector<16x384xf32>
    %c0_7 = arith.constant 0 : index
    %c0_8 = arith.constant 0 : index
    %16 = vector.load %arg4[%c0_7, %c0_8] : memref<384x256xf32, #tpu.memory_space<vmem>>, vector<384x256xf32>
    %cst_9 = arith.constant dense<0.000000e+00> : vector<16x256xf32>
    %17 = tpu.matmul %15, %16, %cst_9 {dimension_numbers = #tpu.dot_dimension_numbers<[1], [0], [0], [1], [0, 0, 1, 1], [], []>} : vector<16x384xf32>, vector<384x256xf32>, vector<16x256xf32> -> vector<16x256xf32>
    %c0_10 = arith.constant 0 : index
    %c0_11 = arith.constant 0 : index
    %18 = vector.load %arg5[%c0_10, %c0_11] : memref<1x256xf32, #tpu.memory_space<vmem>>, vector<1x256xf32>
    %19 = vector.broadcast %18 : vector<1x256xf32> to vector<16x256xf32>
    %20 = arith.addf %17, %19 : vector<16x256xf32>
    %cst_12 = arith.constant 0.000000e+00 : f32
    %21 = vector.broadcast %cst_12 : f32 to vector<16x256xf32>
    %22 = arith.maximumf %20, %21 : vector<16x256xf32>
    %23 = vector.shape_cast %22 : vector<16x256xf32> to vector<2x8x256xf32>
    %cst_13 = arith.constant 0.000000e+00 : f32
    %24 = vector.broadcast %cst_13 : f32 to vector<2x1x256xf32>
    %25 = vector.extract_strided_slice %23 {offsets = [0, 0, 0], sizes = [2, 7, 256], strides = [1, 1, 1]} : vector<2x8x256xf32> to vector<2x7x256xf32>
    %26 = tpu.concatenate %24, %25 in 1 : vector<2x1x256xf32>, vector<2x7x256xf32> -> vector<2x8x256xf32>
    %27 = vector.extract_strided_slice %23 {offsets = [0, 1, 0], sizes = [2, 7, 256], strides = [1, 1, 1]} : vector<2x8x256xf32> to vector<2x7x256xf32>
    %28 = tpu.concatenate %27, %24 in 1 : vector<2x7x256xf32>, vector<2x1x256xf32> -> vector<2x8x256xf32>
    %29 = vector.extract_strided_slice %26 {offsets = [0, 0, 128], sizes = [2, 8, 128], strides = [1, 1, 1]} : vector<2x8x256xf32> to vector<2x8x128xf32>
    %30 = vector.extract_strided_slice %28 {offsets = [0, 0, 0], sizes = [2, 8, 128], strides = [1, 1, 1]} : vector<2x8x256xf32> to vector<2x8x128xf32>
    %31 = tpu.concatenate %29, %23, %30 in 2 : vector<2x8x128xf32>, vector<2x8x256xf32>, vector<2x8x128xf32> -> vector<2x8x512xf32>
    %32 = vector.shape_cast %31 : vector<2x8x512xf32> to vector<16x512xf32>
    %c0_14 = arith.constant 0 : index
    %c0_15 = arith.constant 0 : index
    %33 = vector.load %arg6[%c0_14, %c0_15] : memref<512x384xf32, #tpu.memory_space<vmem>>, vector<512x384xf32>
    %cst_16 = arith.constant dense<0.000000e+00> : vector<16x384xf32>
    %34 = tpu.matmul %32, %33, %cst_16 {dimension_numbers = #tpu.dot_dimension_numbers<[1], [0], [0], [1], [0, 0, 1, 1], [], []>} : vector<16x512xf32>, vector<512x384xf32>, vector<16x384xf32> -> vector<16x384xf32>
    %c0_17 = arith.constant 0 : index
    %c0_18 = arith.constant 0 : index
    %35 = vector.load %arg7[%c0_17, %c0_18] : memref<1x384xf32, #tpu.memory_space<vmem>>, vector<1x384xf32>
    %36 = vector.broadcast %35 : vector<1x384xf32> to vector<16x384xf32>
    %37 = arith.addf %34, %36 : vector<16x384xf32>
    %38 = math.absf %37 : vector<16x384xf32>
    %cst_19 = arith.constant 0.000000e+00 : f32
    %39 = vector.broadcast %cst_19 : f32 to vector<16x384xf32>
    %40 = arith.subf %39, %38 : vector<16x384xf32>
    %41 = math.exp %40 : vector<16x384xf32>
    %cst_20 = arith.constant 0.000000e+00 : f32
    %42 = vector.broadcast %cst_20 : f32 to vector<16x384xf32>
    %43 = arith.cmpf oge, %37, %42 : vector<16x384xf32>
    %cst_21 = arith.constant 1.000000e+00 : f32
    %44 = vector.broadcast %cst_21 : f32 to vector<16x384xf32>
    %45 = arith.select %43, %44, %41 : vector<16x384xi1>, vector<16x384xf32>
    %cst_22 = arith.constant 1.000000e+00 : f32
    %46 = vector.broadcast %cst_22 : f32 to vector<16x384xf32>
    %47 = arith.addf %46, %41 : vector<16x384xf32>
    %48 = tpu.reciprocal %47 : vector<16x384xf32> -> vector<16x384xf32>
    %49 = arith.mulf %45, %48 : vector<16x384xf32>
    %50 = vector.shape_cast %49 : vector<16x384xf32> to vector<2x8x384xf32>
    %c0_23 = arith.constant 0 : index
    %c0_24 = arith.constant 0 : index
    %c0_25 = arith.constant 0 : index
    %51 = vector.load %arg8[%c0_23, %c0_24, %c0_25] : memref<2x8x384xf32, #tpu.memory_space<vmem>>, vector<2x8x384xf32>
    tpu.vector_store %arg8[%c0_23, %c0_24, %c0_25], %50 {strides = array<i32>} : memref<2x8x384xf32, #tpu.memory_space<vmem>>, vector<2x8x384xf32>,
    return
  }
  func.func @transform_0(%arg0: i32) -> (i32, i32) {
    %c0_i32 = arith.constant 0 : i32
    %c0_i32_0 = arith.constant 0 : i32
    return %arg0, %c0_i32 : i32, i32
  }
  func.func @transform_1(%arg0: i32) -> (i32, i32) {
    %c0_i32 = arith.constant 0 : i32
    %c0_i32_0 = arith.constant 0 : i32
    %c0_i32_1 = arith.constant 0 : i32
    return %c0_i32, %c0_i32_0 : i32, i32
  }
  func.func @transform_2(%arg0: i32) -> (i32, i32) {
    %c0_i32 = arith.constant 0 : i32
    %c0_i32_0 = arith.constant 0 : i32
    %c0_i32_1 = arith.constant 0 : i32
    return %c0_i32, %c0_i32_0 : i32, i32
  }
  func.func @transform_3(%arg0: i32) -> (i32, i32) {
    %c0_i32 = arith.constant 0 : i32
    %c0_i32_0 = arith.constant 0 : i32
    %c0_i32_1 = arith.constant 0 : i32
    return %c0_i32, %c0_i32_0 : i32, i32
  }
  func.func @transform_4(%arg0: i32) -> (i32, i32) {
    %c0_i32 = arith.constant 0 : i32
    %c0_i32_0 = arith.constant 0 : i32
    %c0_i32_1 = arith.constant 0 : i32
    return %c0_i32, %c0_i32_0 : i32, i32
  }
  func.func @transform_5(%arg0: i32) -> (i32, i32) {
    %c0_i32 = arith.constant 0 : i32
    %c0_i32_0 = arith.constant 0 : i32
    %c0_i32_1 = arith.constant 0 : i32
    return %c0_i32, %c0_i32_0 : i32, i32
  }
  func.func @transform_6(%arg0: i32) -> (i32, i32) {
    %c0_i32 = arith.constant 0 : i32
    %c0_i32_0 = arith.constant 0 : i32
    %c0_i32_1 = arith.constant 0 : i32
    return %c0_i32, %c0_i32_0 : i32, i32
  }
  func.func @transform_7(%arg0: i32) -> (i32, i32, i32) {
    %c0_i32 = arith.constant 0 : i32
    %c0_i32_0 = arith.constant 0 : i32
    %c0_i32_1 = arith.constant 0 : i32
    return %arg0, %c0_i32, %c0_i32_0 : i32, i32, i32
  }
}

</mosaic_0001>

<bundles_post_ra>
// kernel: _decoder_forward_impl.1
= control target key start
LH: loop header
LB: loop body
LE: loop exit
PB: predicated region body
PF: predicated region fallthrough
CT: control target
= control target key end

     0   :  { %12 = vsyncpa [#allocation3], 0  ;;  %s1779_s0 = inlined_call_operand.hbm [shape: f32[2,8], index: 0, kind: input, shape index: {}]   ;;  %s1780_s1 = inlined_call_operand.hbm [shape: f32[8,1024], index: 1, kind: input, shape index: {}]   ;;  %s1781_s2 = inlined_call_operand.hbm [shape: f32[1,1024], index: 2, kind: input, shape index: {}]   ;;  %s1782_s3 = inlined_call_operand.hbm [shape: f32[384,256], index: 3, kind: input, shape index: {}]   ;;  %s1783_s4 = inlined_call_operand.vmem [shape: f32[1,256], index: 4, kind: input, shape index: {}]   ;;  %s1784_s5 = inlined_call_operand.hbm [shape: f32[512,384], index: 5, kind: input, shape index: {}]   ;;  %s1785_s6 = inlined_call_operand.vmem [shape: f32[1,384], index: 6, kind: input, shape index: {}]   ;;  %s1786_s7 = inlined_call_operand.vmem [shape: f32[2,8,384], index: 7, kind: output, shape index: {}]  }
   0x1   :  { %13 = vsyncpa [#allocation5], 0 }
   0x2   :  { %14 = vsyncpa [#allocation8], 0  ;;  %s1603_s24 = smov [#allocation4]   ;;  %s1604_s26 = smov [#allocation7]  }
   0x3   :  { %s31_s25 = sshll.u32 %s1603_s24, 4  ;;  %s50_s27 = sshll.u32 %s1604_s26, 4  ;;  %s32_s25 = int_to_ptr.vmem [resolvable:$true] %s31_s25  ;;  %s51_s27 = int_to_ptr.vmem [resolvable:$true] %s50_s27 }
   0x4   :  { %s1505_s28 = scalar_lea.vmem %s32_s25, 1024  ;;  %p1510_p1 = scmp.lt.s32.totalorder %s32_s25, %s32_s25 }
   0x5   :  { %p1506_p0 = scmp.ne.s32.totalorder %s32_s25, %s1505_s28  ;;  %p1511_p2 = scmp.lt.s32.totalorder %s1505_s28, %s1505_s28 }
   0x7   :  { %p1512_p3 = por %p1511_p2, %p1510_p1 }
   0x9   :  { %p1513_p4 = pnand %p1512_p3, %p1506_p0 }
   0xb   :  { %1516 = shalt.err (!%p1513_p4)
}
   0xc   :  { %34 = dma.hbm_to_vmem [thread:$0]  %s1780_s1, 1024, %s32_s25, [#allocation5]  }
   0xd   :  { %s1525_s8 = scalar_lea.vmem %s51_s27, 12288  ;;  %p1530_p6 = scmp.lt.s32.totalorder %s51_s27, %s51_s27 }
   0xe   :  { %p1526_p5 = scmp.ne.s32.totalorder %s51_s27, %s1525_s8  ;;  %p1531_p7 = scmp.lt.s32.totalorder %s1525_s8, %s1525_s8 }
  0x10   :  { %p1532_p8 = por %p1531_p7, %p1530_p6 }
  0x12   :  { %p1533_p9 = pnand %p1532_p8, %p1526_p5 }
  0x14   :  { %1536 = shalt.err (!%p1533_p9)
}
  0x15   :  { %s1605_s9 = smov 256   ;;  %s1606_s10 = smov 16  }
  0x16   :  { %56 = dma.hbm_to_vmem [thread:$0]  %s1782_s3, 12288, %s51_s27, [#allocation8], %s1605_s9, %s1605_s9, %s1606_s10  }
  0x17   :  { %s1607_s13 = smov [#allocation2]   ;;  %s1608_s15 = smov [#allocation6]  }
  0x18   :  { %s21_s14 = sshll.u32 %s1607_s13, 4  ;;  %s41_s16 = sshll.u32 %s1608_s15, 4  ;;  %s22_s14 = int_to_ptr.vmem [resolvable:$true] %s21_s14  ;;  %s42_s16 = int_to_ptr.vmem [resolvable:$true] %s41_s16 }
  0x19   :  { %s1545_s1 = scalar_lea.vmem %s22_s14, 32  ;;  %p1550_p11 = scmp.lt.s32.totalorder %s22_s14, %s22_s14 }
  0x1a   :  { %p1546_p10 = scmp.ne.s32.totalorder %s22_s14, %s1545_s1  ;;  %p1551_p12 = scmp.lt.s32.totalorder %s1545_s1, %s1545_s1 }
  0x1c   :  { %p1552_p13 = por %p1551_p12, %p1550_p11 }
  0x1e   :  { %p1553_p0 = pnand %p1552_p13, %p1546_p10 }
  0x20   :  { %1556 = shalt.err (!%p1553_p0)
}
  0x21   :  { %24 = dma.hbm_to_vmem [thread:$0]  %s1779_s0, 32, %s22_s14, [#allocation3]  }
  0x22   :  { %s1565_s19 = scalar_lea.vmem %s42_s16, 128  ;;  %p1570_p2 = scmp.lt.s32.totalorder %s42_s16, %s42_s16 }
  0x23   :  { %p1566_p1 = scmp.ne.s32.totalorder %s42_s16, %s1565_s19  ;;  %p1571_p3 = scmp.lt.s32.totalorder %s1565_s19, %s1565_s19 }
  0x25   :  { %p1572_p4 = por %p1571_p3, %p1570_p2 }
  0x27   :  { %p1573_p5 = pnand %p1572_p4, %p1566_p1 }
  0x29   :  { %1576 = shalt.err (!%p1573_p5)
}
  0x2a   :  { %44 = dma.hbm_to_vmem [thread:$0]  %s1781_s2, 128, %s42_s16, [#allocation5]  }
  0x2b   :  { %s1609_s21 = smov [#allocation9]  }
  0x2c   :  { %s64_s22 = sshll.u32 %s1609_s21, 4  ;;  %s65_s22 = int_to_ptr.vmem [resolvable:$true] %s64_s22 }
  0x2d   :  { %s1585_s23 = scalar_lea.vmem %s65_s22, 24576  ;;  %p1590_p7 = scmp.lt.s32.totalorder %s65_s22, %s65_s22 }
  0x2e   :  { %p1586_p6 = scmp.ne.s32.totalorder %s65_s22, %s1585_s23  ;;  %p1591_p8 = scmp.lt.s32.totalorder %s1585_s23, %s1585_s23 }
  0x30   :  { %p1592_p9 = por %p1591_p8, %p1590_p7 }
  0x32   :  { %p1593_p10 = pnand %p1592_p9, %p1586_p6 }
  0x34   :  { %1596 = shalt.err (!%p1593_p10)
}
  0x35   :  { %s1610_s0 = smov 384   ;;  %s1611_s24 = smov 24  }
  0x36   :  { %70 = dma.hbm_to_vmem [thread:$0]  %s1784_s5, 24576, %s65_s22, [#allocation8], %s1610_s0, %s1610_s0, %s1611_s24  }
  0x37   :  { %1597 = dma.done.wait [#allocation3], 32  }
  0x38   :  { %1598 = vsyncadd [#allocation3], 4294967264 }
  0x39   :  { %1599 = dma.done.wait [#allocation5], 1152  }
  0x3a   :  { %1600 = vsyncadd [#allocation5], 4294966144 }
  0x3b   :  { %1601 = dma.done.wait [#allocation8], 36864  }
  0x3c   :  { %1602 = vsyncadd [#allocation8], 4294930432  ;;  %v1612_v0 = vmov 0.0   ;;  %v90_v1 = vld [vmem:[#allocation4 + $0x8] sm:$0xff]  ;;  %v89_v2 = vld [vmem:[#allocation4] sm:$0xff]  ;;  %vm139_vm0 = vcmask 64512  }
  0x3d   :  { %207 = vmatprep.mubr.f32.mxu1 %v1612_v0  ;;  %v88_v3 = vld [vmem:[#allocation2] sm:$0x3]  ;;  %173 = vmatprep.subr.mxu1 %v90_v1  ;;  %v91_v5 = vld [vmem:[#allocation4 + $0x10] sm:$0xff]  ;;  %v94_v6 = vld [vmem:[#allocation4 + $0x28] sm:$0xff]  ;;  %vm491_vm1 = vcmask 1040384   ;;  %vm498_vm3 = vcmask 1046528  }
  0x3e   :  { %v92_v4 = vld [vmem:[#allocation4 + $0x18] sm:$0xff]  ;;  %174 = vmatpush1.msra.mxu1 %v89_v2  ;;  %v532_v7 = vld [vmem:[#allocation7 + $0xf8] sm:$0xff]  ;;  %v530_v9 = vld [vmem:[#allocation7 + $0xe8] sm:$0xff] }
  0x3f   :  { %1363 = vmatmul.mubr.msk.f32.vlgmr.msra.gmra.mxu1 %vm139_vm0, %v88_v3  ;;  %244 = vmatprep.subr.mxu1 %v92_v4  ;;  %v531_v8 = vld [vmem:[#allocation7 + $0xf0] sm:$0xff]  ;;  %v93_v10 = vld [vmem:[#allocation4 + $0x20] sm:$0xff]  ;;  %v529_v12 = vld [vmem:[#allocation7 + $0xe0] sm:$0xff] }
  0x40   :  { %245 = vmatpush1.msra.mxu1 %v91_v5  ;;  %278 = vmatprep.mubr.f32.mxu1 %v1612_v0  ;;  %v96_v11 = vld [vmem:[#allocation4 + $0x38] sm:$0xff]  ;;  %v528_v13 = vld [vmem:[#allocation7 + $0xd8] sm:$0xff]  ;;  %v95_v15 = vld [vmem:[#allocation4 + $0x30] sm:$0xff] }
  0x41   :  { %315 = vmatprep.subr.mxu1 %v94_v6  ;;  %609 = vmatprep.subr.mxu0 %v532_v7  ;;  %v527_v14 = vld [vmem:[#allocation7 + $0xd0] sm:$0xff]  ;;  %v526_v16 = vld [vmem:[#allocation7 + $0xc8] sm:$0xff]  ;;  %v525_v17 = vld [vmem:[#allocation7 + $0xc0] sm:$0xff] }
  0x42   :  { %610 = vmatpush1.msra.mxu0 %v531_v8  ;;  %v524_v18 = vld [vmem:[#allocation7 + $0xb8] sm:$0xff]  ;;  %v523_v19 = vld [vmem:[#allocation7 + $0xb0] sm:$0xff]  ;;  %v522_v20 = vld [vmem:[#allocation7 + $0xa8] sm:$0xff] }
  0x43   :  { %1364 = vmatmul.mubr.msk.f32.vlgmr.msra.gmra.mxu1 %vm139_vm0, %v88_v3  ;;  %611 = vmatprep.subr.mxu0 %v530_v9  ;;  %v596_v21 = vld [vmem:[#allocation7 + $0x2f8] sm:$0xff]  ;;  %v521_v22 = vld [vmem:[#allocation7 + $0xa0] sm:$0xff]  ;;  %v519_v24 = vld [vmem:[#allocation7 + $0x90] sm:$0xff] }
  0x44   :  { %316 = vmatpush1.msra.mxu1 %v93_v10  ;;  %349 = vmatprep.mubr.f32.mxu1 %v1612_v0  ;;  %v520_v23 = vld [vmem:[#allocation7 + $0x98] sm:$0xff]  ;;  %v518_v25 = vld [vmem:[#allocation7 + $0x88] sm:$0xff]  ;;  %v517_v26 = vld [vmem:[#allocation7 + $0x80] sm:$0xff] }
  0x45   :  { %386 = vmatprep.subr.mxu1 %v96_v11  ;;  %612 = vmatpush1.msra.mxu0 %v529_v12  ;;  %v516_v27 = vld [vmem:[#allocation7 + $0x78] sm:$0xff]  ;;  %v515_v28 = vld [vmem:[#allocation7 + $0x70] sm:$0xff]  ;;  %v514_v29 = vld [vmem:[#allocation7 + $0x68] sm:$0xff] }
  0x46   :  { %613 = vmatprep.subr.mxu0 %v528_v13  ;;  %v513_v30 = vld [vmem:[#allocation7 + $0x60] sm:$0xff]  ;;  %v512_v31 = vld [vmem:[#allocation7 + $0x58] sm:$0xff]  ;;  %v511_v32 = vld [vmem:[#allocation7 + $0x50] sm:$0xff] }
  0x47   :  { %1365 = vmatmul.mubr.msk.f32.vlgmr.msra.gmra.mxu1 %vm139_vm0, %v88_v3  ;;  %614 = vmatpush1.msra.mxu0 %v527_v14  ;;  %v510_v33 = vld [vmem:[#allocation7 + $0x48] sm:$0xff]  ;;  %v509_v34 = vld [vmem:[#allocation7 + $0x40] sm:$0xff]  ;;  %v508_v35 = vld [vmem:[#allocation7 + $0x38] sm:$0xff] }
  0x48   :  { %387 = vmatpush1.msra.mxu1 %v95_v15  ;;  %420 = vmatprep.mubr.f32.mxu1 %v1612_v0  ;;  %v507_v36 = vld [vmem:[#allocation7 + $0x30] sm:$0xff]  ;;  %v506_v37 = vld [vmem:[#allocation7 + $0x28] sm:$0xff]  ;;  %v505_v38 = vld [vmem:[#allocation7 + $0x20] sm:$0xff] }
  0x49   :  { %615 = vmatprep.subr.mxu0 %v526_v16  ;;  %686 = vmatprep.subr.mxu1 %v596_v21  ;;  %v504_v39 = vld [vmem:[#allocation7 + $0x18] sm:$0xff]  ;;  %v503_v40 = vld [vmem:[#allocation7 + $0x10] sm:$0xff]  ;;  %v502_v41 = vld [vmem:[#allocation7 + $0x8] sm:$0xff] }
  0x4a   :  { %616 = vmatpush1.msra.mxu0 %v525_v17  ;;  %v501_v42 = vld [vmem:[#allocation7] sm:$0xff]  ;;  %v564_v43 = vld [vmem:[#allocation7 + $0x1f8] sm:$0xff]  ;;  %v563_v44 = vld [vmem:[#allocation7 + $0x1f0] sm:$0xff] }
  0x4b   :  { %1366 = vmatmul.mubr.msk.f32.vlgmr.msra.gmra.mxu1 %vm139_vm0, %v88_v3  ;;  %617 = vmatprep.subr.mxu0 %v524_v18  ;;  %v595_v45 = vld [vmem:[#allocation7 + $0x2f0] sm:$0xff]  ;;  %v562_v46 = vld [vmem:[#allocation7 + $0x1e8] sm:$0xff]  ;;  %v561_v48 = vld [vmem:[#allocation7 + $0x1e0] sm:$0xff] }
  0x4c   :  { %618 = vmatpush1.msra.mxu0 %v523_v19  ;;  %750 = vmatprep.mubr.f32.mxu1 %v1612_v0  ;;  %v594_v47 = vld [vmem:[#allocation7 + $0x2e8] sm:$0xff]  ;;  %v593_v49 = vld [vmem:[#allocation7 + $0x2e0] sm:$0xff]  ;;  %v560_v50 = vld [vmem:[#allocation7 + $0x1d8] sm:$0xff] }
  0x4d   :  { %619 = vmatprep.subr.mxu0 %v522_v20  ;;  %687 = vmatpush1.msra.mxu1 %v595_v45  ;;  %v592_v51 = vld [vmem:[#allocation7 + $0x2d8] sm:$0xff]  ;;  %v559_v52 = vld [vmem:[#allocation7 + $0x1d0] sm:$0xff]  ;;  %v558_v54 = vld [vmem:[#allocation7 + $0x1c8] sm:$0xff]  ;;  %v99_v45 = vlaneseq }
  0x4e   :  { %620 = vmatpush1.msra.mxu0 %v521_v22  ;;  %688 = vmatprep.subr.mxu1 %v594_v47  ;;  %v591_v53 = vld [vmem:[#allocation7 + $0x2d0] sm:$0xff]  ;;  %v590_v55 = vld [vmem:[#allocation7 + $0x2c8] sm:$0xff]  ;;  %v557_v56 = vld [vmem:[#allocation7 + $0x1c0] sm:$0xff] }
  0x4f   :  { %621 = vmatprep.subr.mxu0 %v520_v23  ;;  %689 = vmatpush1.msra.mxu1 %v593_v49  ;;  %v589_v57 = vld [vmem:[#allocation7 + $0x2c0] sm:$0xff]  ;;  %v556_v58 = vld [vmem:[#allocation7 + $0x1b8] sm:$0xff]  ;;  %v555_v60 = vld [vmem:[#allocation7 + $0x1b0] sm:$0xff] }
  0x50   :  { %622 = vmatpush1.msra.mxu0 %v519_v24  ;;  %690 = vmatprep.subr.mxu1 %v592_v51  ;;  %v588_v59 = vld [vmem:[#allocation7 + $0x2b8] sm:$0xff]  ;;  %v587_v61 = vld [vmem:[#allocation7 + $0x2b0] sm:$0xff]  ;;  %v554_v62 = vld [vmem:[#allocation7 + $0x1a8] sm:$0xff] }
  0x51   :  { %623 = vmatprep.subr.mxu0 %v518_v25  ;;  %691 = vmatpush1.msra.mxu1 %v591_v53  ;;  %v586_v63 = vld [vmem:[#allocation7 + $0x2a8] sm:$0xff]  ;;  %v553_v1 = vld [vmem:[#allocation7 + $0x1a0] sm:$0xff]  ;;  %v552_v3 = vld [vmem:[#allocation7 + $0x198] sm:$0xff] }
  0x52   :  { %624 = vmatpush1.msra.mxu0 %v517_v26  ;;  %692 = vmatprep.subr.mxu1 %v590_v55  ;;  %v585_v2 = vld [vmem:[#allocation7 + $0x2a0] sm:$0xff]  ;;  %v584_v4 = vld [vmem:[#allocation7 + $0x298] sm:$0xff]  ;;  %v551_v5 = vld [vmem:[#allocation7 + $0x190] sm:$0xff] }
  0x53   :  { %625 = vmatprep.subr.mxu0 %v516_v27  ;;  %693 = vmatpush1.msra.mxu1 %v589_v57  ;;  %v583_v6 = vld [vmem:[#allocation7 + $0x290] sm:$0xff]  ;;  %v550_v7 = vld [vmem:[#allocation7 + $0x188] sm:$0xff]  ;;  %v549_v9 = vld [vmem:[#allocation7 + $0x180] sm:$0xff] }
  0x54   :  { %626 = vmatpush1.msra.mxu0 %v515_v28  ;;  %694 = vmatprep.subr.mxu1 %v588_v59  ;;  %v582_v8 = vld [vmem:[#allocation7 + $0x288] sm:$0xff]  ;;  %v581_v10 = vld [vmem:[#allocation7 + $0x280] sm:$0xff]  ;;  %v548_v11 = vld [vmem:[#allocation7 + $0x178] sm:$0xff] }
  0x55   :  { %627 = vmatprep.subr.mxu0 %v514_v29  ;;  %695 = vmatpush1.msra.mxu1 %v587_v61  ;;  %v580_v12 = vld [vmem:[#allocation7 + $0x278] sm:$0xff]  ;;  %v547_v13 = vld [vmem:[#allocation7 + $0x170] sm:$0xff]  ;;  %v546_v15 = vld [vmem:[#allocation7 + $0x168] sm:$0xff] }
  0x56   :  { %628 = vmatpush1.msra.mxu0 %v513_v30  ;;  %696 = vmatprep.subr.mxu1 %v586_v63  ;;  %v579_v14 = vld [vmem:[#allocation7 + $0x270] sm:$0xff]  ;;  %v578_v16 = vld [vmem:[#allocation7 + $0x268] sm:$0xff]  ;;  %v545_v17 = vld [vmem:[#allocation7 + $0x160] sm:$0xff] }
  0x57   :  { %629 = vmatprep.subr.mxu0 %v512_v31  ;;  %697 = vmatpush1.msra.mxu1 %v585_v2  ;;  %v577_v18 = vld [vmem:[#allocation7 + $0x260] sm:$0xff]  ;;  %v544_v19 = vld [vmem:[#allocation7 + $0x158] sm:$0xff]  ;;  %v543_v21 = vld [vmem:[#allocation7 + $0x150] sm:$0xff] }
  0x58   :  { %630 = vmatpush1.msra.mxu0 %v511_v32  ;;  %698 = vmatprep.subr.mxu1 %v584_v4  ;;  %v576_v20 = vld [vmem:[#allocation7 + $0x258] sm:$0xff]  ;;  %v575_v22 = vld [vmem:[#allocation7 + $0x250] sm:$0xff]  ;;  %v542_v23 = vld [vmem:[#allocation7 + $0x148] sm:$0xff] }
  0x59   :  { %631 = vmatprep.subr.mxu0 %v510_v33  ;;  %699 = vmatpush1.msra.mxu1 %v583_v6  ;;  %v574_v24 = vld [vmem:[#allocation7 + $0x248] sm:$0xff]  ;;  %v541_v25 = vld [vmem:[#allocation7 + $0x140] sm:$0xff]  ;;  %v540_v27 = vld [vmem:[#allocation7 + $0x138] sm:$0xff] }
  0x5a   :  { %632 = vmatpush1.msra.mxu0 %v509_v34  ;;  %700 = vmatprep.subr.mxu1 %v582_v8  ;;  %v573_v26 = vld [vmem:[#allocation7 + $0x240] sm:$0xff]  ;;  %v572_v28 = vld [vmem:[#allocation7 + $0x238] sm:$0xff]  ;;  %v539_v29 = vld [vmem:[#allocation7 + $0x130] sm:$0xff] }
  0x5b   :  { %633 = vmatprep.subr.mxu0 %v508_v35  ;;  %701 = vmatpush1.msra.mxu1 %v581_v10  ;;  %v571_v30 = vld [vmem:[#allocation7 + $0x230] sm:$0xff]  ;;  %v538_v31 = vld [vmem:[#allocation7 + $0x128] sm:$0xff]  ;;  %v537_v33 = vld [vmem:[#allocation7 + $0x120] sm:$0xff] }
  0x5c   :  { %634 = vmatpush1.msra.mxu0 %v507_v36  ;;  %702 = vmatprep.subr.mxu1 %v580_v12  ;;  %v570_v32 = vld [vmem:[#allocation7 + $0x228] sm:$0xff]  ;;  %v569_v34 = vld [vmem:[#allocation7 + $0x220] sm:$0xff]  ;;  %v536_v35 = vld [vmem:[#allocation7 + $0x118] sm:$0xff] }
  0x5d   :  { %635 = vmatprep.subr.mxu0 %v506_v37  ;;  %703 = vmatpush1.msra.mxu1 %v579_v14  ;;  %v568_v36 = vld [vmem:[#allocation7 + $0x218] sm:$0xff]  ;;  %v535_v37 = vld [vmem:[#allocation7 + $0x110] sm:$0xff]  ;;  %vm1699_vm2 = vmneg %vm491_vm1 }
  0x5e   :  { %636 = vmatpush1.msra.mxu0 %v505_v38  ;;  %704 = vmatprep.subr.mxu1 %v578_v16  ;;  %v567_v38 = vld [vmem:[#allocation7 + $0x210] sm:$0xff] }
  0x5f   :  { %637 = vmatprep.subr.mxu0 %v504_v39  ;;  %705 = vmatpush1.msra.mxu1 %v577_v18  ;;  %v534_v39 = vld [vmem:[#allocation7 + $0x108] sm:$0xff] }
  0x60   :  { %638 = vmatpush1.msra.mxu0 %v503_v40  ;;  %706 = vmatprep.subr.mxu1 %v576_v20  ;;  %v566_v40 = vld [vmem:[#allocation7 + $0x208] sm:$0xff] }
  0x61   :  { %639 = vmatprep.subr.mxu0 %v502_v41  ;;  %707 = vmatpush1.msra.mxu1 %v575_v22  ;;  %v533_v41 = vld [vmem:[#allocation7 + $0x100] sm:$0xff] }
  0x62   :  { %640 = vmatpush1.msra.mxu0 %v501_v42  ;;  %708 = vmatprep.subr.mxu1 %v574_v24  ;;  %v565_v42 = vld [vmem:[#allocation7 + $0x200] sm:$0xff] }
  0x63   :  { %641 = vmatprep.subr.mxu0 %v564_v43  ;;  %709 = vmatpush1.msra.mxu1 %v573_v26  ;;  %v925_v43 = vld [vmem:[#allocation9 + $0x470] sm:$0xff] }
  0x64   :  { %642 = vmatpush2.msra.mxu0 %v563_v44  ;;  %710 = vmatprep.subr.mxu1 %v572_v28  ;;  %v829_v44 = vld [vmem:[#allocation9 + $0x170] sm:$0xff] }
  0x65   :  { %643 = vmatprep.subr.mxu0 %v562_v46  ;;  %711 = vmatpush1.msra.mxu1 %v571_v30  ;;  %v1679_v46 = vshrl.u32 %v99_v45, 7 }
  0x66   :  { %644 = vmatpush2.msra.mxu0 %v561_v48  ;;  %712 = vmatprep.subr.mxu1 %v570_v32 }
  0x67   :  { %645 = vmatprep.subr.mxu0 %v560_v50  ;;  %713 = vmatpush1.msra.mxu1 %v569_v34  ;;  %v1682_v47 = vsub.s32 1, %v1679_v46  ;;  %v109_v48 = vsub.s32 2, %v1679_v46  ;;  %v113_v49 = vsub.s32 3, %v1679_v46  ;;  %v1687_v51 = vsub.s32 0, %v1679_v46 }
  0x68   :  { %646 = vmatpush2.msra.mxu0 %v559_v52  ;;  %714 = vmatprep.subr.mxu1 %v568_v36  ;;  %v97_v52 = vld [vmem:[#allocation6] sm:$0xff]  ;;  %v121_v59 = vsub.s32 5, %v1679_v46  ;;  %v125_v61 = vsub.s32 6, %v1679_v46  ;;  %v129_v6 = vsub.s32 7, %v1679_v46 }
  0x69   :  { %647 = vmatprep.subr.mxu0 %v558_v54  ;;  %715 = vmatpush1.msra.mxu1 %v567_v38  ;;  %v117_v54 = vsub.s32 4, %v1679_v46  ;;  %v106_v55 = vrot.slane %v97_v52, %v1682_v47  ;;  %v114_v57 = vrot.slane %v97_v52, %v113_v49 }
  0x6a   :  { %648 = vmatpush2.msra.mxu0 %v557_v56  ;;  %716 = vmatprep.subr.mxu1 %v566_v40  ;;  %v110_v56 = vrot.slane %v97_v52, %v109_v48  ;;  %v122_v8 = vrot.slane %v97_v52, %v121_v59 }
  0x6b   :  { %649 = vmatprep.subr.mxu0 %v556_v58  ;;  %717 = vmatpush1.msra.mxu1 %v565_v42  ;;  %v118_v2 = vrot.slane %v97_v52, %v117_v54  ;;  %v924_v54 = vld [vmem:[#allocation9 + $0x468] sm:$0xff] }
  0x6c   :  { %650 = vmatpush2.msra.mxu0 %v555_v60  ;;  %992 = vmatprep.subr.mxu1 %v829_v44  ;;  %v102_v60 = vrot.slane %v97_v52, %v1687_v51 }
  0x6d   :  { %651 = vmatprep.subr.mxu0 %v554_v62  ;;  %v1613_v62 = vmov 1983009808  }
  0x6e   :  { %652 = vmatpush2.msra.mxu0 %v553_v1  ;;  %v437_v63 = vunpack.c.l.s4 %v1613_v62  ;;  %v919_v62 = vld [vmem:[#allocation9 + $0x440] sm:$0xff] }
  0x6f   :  { %653 = vmatprep.subr.mxu0 %v552_v3 }
  0x70   :  { %654 = vmatpush2.msra.mxu0 %v551_v5  ;;  %v438_v12 = vunpack.c.0.s8 %v437_v63  ;;  %v823_v63 = vld [vmem:[#allocation9 + $0x140] sm:$0xff] }
  0x71   :  { %655 = vmatprep.subr.mxu0 %v550_v7 }
  0x72   :  { %656 = vmatpush2.msra.mxu0 %v549_v9 }
  0x73   :  { %657 = vmatprep.subr.mxu0 %v548_v11  ;;  %v126_v11 = vrot.slane %v97_v52, %v125_v61  ;;  %v825_v61 = vld [vmem:[#allocation9 + $0x150] sm:$0xff] }
  0x74   :  { %658 = vmatpush2.msra.mxu0 %v547_v13 }
  0x75   :  { %659 = vmatprep.subr.mxu0 %v546_v15 }
  0x76   :  { %660 = vmatpush2.msra.mxu0 %v545_v17  ;;  %v130_v17 = vrot.slane %v97_v52, %v129_v6  ;;  %v913_v6 = vld [vmem:[#allocation9 + $0x410] sm:$0xff] }
  0x77   :  { %661 = vmatprep.subr.mxu0 %v544_v19  ;;  %v1614_v19 = vmov 1934713408  }
  0x78   :  { %662 = vmatpush2.msra.mxu0 %v543_v21  ;;  %v469_v20 = vunpack.c.l.s4 %v1614_v19  ;;  %v808_v19 = vld [vmem:[#allocation9 + $0xc8] sm:$0xff] }
  0x79   :  { %663 = vmatprep.subr.mxu0 %v542_v23 }
  0x7a   :  { %664 = vmatpush2.msra.mxu0 %v541_v25  ;;  %v441_v25 = vsub.s32 %v438_v12, %v1679_v46  ;;  %v909_v12 = vld [vmem:[#allocation9 + $0x3f0] sm:$0xff] }
  0x7b   :  { %665 = vmatprep.subr.mxu0 %v540_v27 }
  0x7c   :  { %666 = vmatpush2.msra.mxu0 %v539_v29 }
  0x7d   :  { %667 = vmatprep.subr.mxu0 %v538_v31  ;;  %v470_v31 = vunpack.c.0.s8 %v469_v20  ;;  %v903_v20 = vld [vmem:[#allocation9 + $0x3c0] sm:$0xff] }
  0x7e   :  { %668 = vmatpush2.msra.mxu0 %v537_v33 }
  0x7f   :  { %669 = vmatprep.subr.mxu0 %v536_v35 }
  0x80   :  { %670 = vmatpush2.msra.mxu0 %v535_v37 }
  0x81   :  { %671 = vmatprep.subr.mxu0 %v534_v39 }
  0x82   :  { %672 = vmatpush2.msra.mxu0 %v533_v41  ;;  %v473_v41 = vsub.s32 %v470_v31, %v1679_v46  ;;  %v799_v31 = vld [vmem:[#allocation9 + $0x80] sm:$0xff] }
  0x83   :  { %1069 = vmatprep.subr.mxu0 %v925_v43 }
  0xff   :  { %v209_v50 = vpop.f32.mrf.mxu1 }
 0x100   :  { %v210_v9 = vadd.f32 %v209_v50, %v102_v60  ;;  %v921_v60 = vld [vmem:[#allocation9 + $0x450] sm:$0xff] }
 0x101   :  { %v211_v53 = vpop.f32.mrf.mxu1 }
 0x102   :  { %v212_v3 = vadd.f32 %v211_v53, %v106_v55  ;;  %v427_v21 = vmax.f32 %v210_v9, 0.0  ;;  %v828_v55 = vld [vmem:[#allocation9 + $0x168] sm:$0xff] }
 0x103   :  { %v280_v58 = vpop.f32.mrf.mxu1  ;;  %v816_v9 = vld [vmem:[#allocation9 + $0x108] sm:$0xff] }
 0x104   :  { %v281_v4 = vadd.f32 %v280_v58, %v110_v56  ;;  %v428_v14 = vmax.f32 %v212_v3, 0.0  ;;  %v922_v56 = vld [vmem:[#allocation9 + $0x458] sm:$0xff]  ;;  %v820_v3 = vld [vmem:[#allocation9 + $0x128] sm:$0xff] }
 0x105   :  { %v282_v1 = vpop.f32.mrf.mxu1 }
 0x106   :  { %v283_v5 = vadd.f32 %v282_v1, %v114_v57  ;;  %v429_v15 = vmax.f32 %v281_v4, 0.0  ;;  %v826_v57 = vld [vmem:[#allocation9 + $0x158] sm:$0xff]  ;;  %v915_v4 = vld [vmem:[#allocation9 + $0x420] sm:$0xff] }
 0x107   :  { %v351_v7 = vpop.f32.mrf.mxu1  ;;  %v918_v1 = vld [vmem:[#allocation9 + $0x438] sm:$0xff] }
 0x108   :  { %v430_v10 = vmax.f32 %v283_v5, 0.0  ;;  %v352_v16 = vadd.f32 %v351_v7, %v118_v2  ;;  %v435_v27 = vcombine.low %v427_v21, %v429_v15  ;;  %v822_v2 = vld [vmem:[#allocation9 + $0x138] sm:$0xff]  ;;  %v819_v5 = vld [vmem:[#allocation9 + $0x120] sm:$0xff]  ;;  %v817_v7 = vld [vmem:[#allocation9 + $0x110] sm:$0xff] }
 0x109   :  { %v353_v13 = vpop.f32.mrf.mxu1  ;;  %v811_v15 = vld [vmem:[#allocation9 + $0xe0] sm:$0xff] }
 0x10a   :  { %v443_v22 = vcombine.low %v428_v14, %v430_v10  ;;  %v354_v23 = vadd.f32 %v353_v13, %v122_v8  ;;  %v431_v28 = vmax.f32 %v352_v16, 0.0  ;;  %v442_v36 = vrot.slane %v435_v27, %v441_v25  ;;  %v912_v8 = vld [vmem:[#allocation9 + $0x408] sm:$0xff]  ;;  %v910_v10 = vld [vmem:[#allocation9 + $0x3f8] sm:$0xff]  ;;  %v813_v13 = vld [vmem:[#allocation9 + $0xf0] sm:$0xff] }
 0x10b   :  { %v422_v18 = vpop.f32.mrf.mxu1  ;;  %v907_v14 = vld [vmem:[#allocation9 + $0x3e0] sm:$0xff]  ;;  %v906_v16 = vld [vmem:[#allocation9 + $0x3d8] sm:$0xff] }
 0x10c   :  { %v423_v24 = vadd.f32 %v422_v18, %v126_v11  ;;  %v450_v32 = vrot.slane %v443_v22, %v441_v25  ;;  %v432_v33 = vmax.f32 %v354_v23, 0.0  ;;  %v814_v11 = vld [vmem:[#allocation9 + $0xf8] sm:$0xff]  ;;  %v904_v18 = vld [vmem:[#allocation9 + $0x3c8] sm:$0xff]  ;;  %v807_v21 = vld [vmem:[#allocation9 + $0xc0] sm:$0xff] }
 0x10d   :  { %v424_v26 = vpop.f32.mrf.mxu1  ;;  %v901_v22 = vld [vmem:[#allocation9 + $0x3b0] sm:$0xff]  ;;  %v802_v27 = vld [vmem:[#allocation9 + $0x98] sm:$0xff] }
 0x10e   :  { %v433_v29 = vmax.f32 %v423_v24, 0.0  ;;  %v425_v30 = vadd.f32 %v424_v26, %v130_v17  ;;  %v467_v38 = vcombine.low %v442_v36, %v450_v32  ;;  %v810_v17 = vld [vmem:[#allocation9 + $0xd8] sm:$0xff]  ;;  %v805_v23 = vld [vmem:[#allocation9 + $0xb0] sm:$0xff]  ;;  %v900_v24 = vld [vmem:[#allocation9 + $0x3a8] sm:$0xff] }
 0x10f   :  { %v898_v26 = vld [vmem:[#allocation9 + $0x398] sm:$0xff]  ;;  %v891_v36 = vld [vmem:[#allocation9 + $0x360] sm:$0xff] }
 0x110   :  { %v451_v34 = vcombine.low %v431_v28, %v433_v29  ;;  %v434_v35 = vmax.f32 %v425_v30, 0.0  ;;  %v474_v43 = vrot.slane %v467_v38, %v473_v41  ;;  %v897_v28 = vld [vmem:[#allocation9 + $0x390] sm:$0xff]  ;;  %v895_v30 = vld [vmem:[#allocation9 + $0x380] sm:$0xff]  ;;  %v894_v32 = vld [vmem:[#allocation9 + $0x378] sm:$0xff] }
 0x111   :  { %v801_v29 = vld [vmem:[#allocation9 + $0x90] sm:$0xff] }
 0x112   :  { %v459_v37 = vcombine.low %v432_v33, %v434_v35  ;;  %v458_v39 = vrot.slane %v451_v34, %v441_v25  ;;  %v798_v33 = vld [vmem:[#allocation9 + $0x78] sm:$0xff]  ;;  %v892_v34 = vld [vmem:[#allocation9 + $0x368] sm:$0xff]  ;;  %v889_v38 = vld [vmem:[#allocation9 + $0x350] sm:$0xff] }
 0x113   :  { %v796_v35 = vld [vmem:[#allocation9 + $0x68] sm:$0xff] }
 0x114   :  { %v466_v40 = vrot.slane %v459_v37, %v441_v25  ;;  %v804_v25 = vld [vmem:[#allocation9 + $0xa8] sm:$0xff]  ;;  %v795_v37 = vld [vmem:[#allocation9 + $0x60] sm:$0xff] }
 0x116   :  { %v475_v42 = vcombine.low %v458_v39, %v466_v40  ;;  %v793_v39 = vld [vmem:[#allocation9 + $0x50] sm:$0xff]  ;;  %v888_v40 = vld [vmem:[#allocation9 + $0x348] sm:$0xff] }
 0x118   :  { %v482_v44 = vrot.slane %v475_v42, %v473_v41  ;;  %v792_v41 = vld [vmem:[#allocation9 + $0x48] sm:$0xff]  ;;  %v886_v42 = vld [vmem:[#allocation9 + $0x338] sm:$0xff] }
 0x11a   :  { %v483_v45 = vcombine.low %v474_v43, %v482_v44  ;;  %v484_v53 = vcombine.high %v474_v43, %v482_v44  ;;  %v790_v43 = vld [vmem:[#allocation9 + $0x38] sm:$0xff]  ;;  %v885_v44 = vld [vmem:[#allocation9 + $0x330] sm:$0xff] }
 0x11c   :  { %v494_v50 = vrot.slane %v483_v45, 1  ;;  %673 = vmatprep.mubr.f32.mxu0 %v483_v45  ;;  %v487_v52 = vrot.slane %v483_v45, 7  ;;  %v488_v58 = vrot.slane %v484_v53, 7  ;;  %v495_v59 = vrot.slane %v484_v53, 1  ;;  %v789_v45 = vld [vmem:[#allocation9 + $0x30] sm:$0xff] }
 0x11e   :  { %1368 = vmatmul.mubr.msk.f32.vlgmr.msra.gmra.mxu0 %vm1699_vm2, %v487_v52  ;;  %1371 = vmatmul.mubr.msk.f32.vlgmr.msra.gmra.mxu1 %vm498_vm3, %v494_v50  ;;  %v883_v50 = vld [vmem:[#allocation9 + $0x320] sm:$0xff] }
 0x11f   :  { %679 = vmatprep.mubr.f32.mxu0 %v484_v53  ;;  %756 = vmatprep.mubr.f32.mxu1 %v1612_v0  ;;  %v916_v0 = vld [vmem:[#allocation9 + $0x428] sm:$0xff]  ;;  %v787_v52 = vld [vmem:[#allocation9 + $0x20] sm:$0xff]  ;;  %v882_v53 = vld [vmem:[#allocation9 + $0x318] sm:$0xff] }
 0x120   :  { %1070 = vmatpush1.msra.mxu0 %v924_v54  ;;  %993 = vmatpush1.msra.mxu1 %v828_v55  ;;  %v786_v54 = vld [vmem:[#allocation9 + $0x18] sm:$0xff]  ;;  %v880_v55 = vld [vmem:[#allocation9 + $0x308] sm:$0xff] }
 0x121   :  { %1071 = vmatprep.subr.mxu0 %v922_v56  ;;  %994 = vmatprep.subr.mxu1 %v826_v57  ;;  %v784_v56 = vld [vmem:[#allocation9 + $0x8] sm:$0xff]  ;;  %v879_v57 = vld [vmem:[#allocation9 + $0x300] sm:$0xff] }
 0x122   :  { %1370 = vmatmul.mubr.msk.f32.gmra.mxu0 %vm1699_vm2, %v488_v58  ;;  %1372 = vmatmul.mubr.msk.f32.gmra.mxu1 %vm498_vm3, %v495_v59  ;;  %v783_v58 = vld [vmem:[#allocation9] sm:$0xff]  ;;  %v973_v59 = vld [vmem:[#allocation9 + $0x5f0] sm:$0xff] }
 0x123   :  { %1072 = vmatpush1.msra.mxu0 %v921_v60  ;;  %995 = vmatpush1.msra.mxu1 %v825_v61  ;;  %v877_v60 = vld [vmem:[#allocation9 + $0x2f0] sm:$0xff]  ;;  %v972_v61 = vld [vmem:[#allocation9 + $0x5e8] sm:$0xff] }
 0x124   :  { %1073 = vmatprep.subr.mxu0 %v919_v62  ;;  %996 = vmatprep.subr.mxu1 %v823_v63  ;;  %v876_v62 = vld [vmem:[#allocation9 + $0x2e8] sm:$0xff]  ;;  %v970_v63 = vld [vmem:[#allocation9 + $0x5d8] sm:$0xff] }
 0x125   :  { %1074 = vmatpush1.msra.mxu0 %v918_v1  ;;  %997 = vmatpush1.msra.mxu1 %v822_v2  ;;  %v874_v1 = vld [vmem:[#allocation9 + $0x2d8] sm:$0xff]  ;;  %v969_v2 = vld [vmem:[#allocation9 + $0x5d0] sm:$0xff] }
 0x126   :  { %1075 = vmatprep.subr.mxu0 %v916_v0  ;;  %998 = vmatprep.subr.mxu1 %v820_v3  ;;  %v873_v0 = vld [vmem:[#allocation9 + $0x2d0] sm:$0xff]  ;;  %v967_v3 = vld [vmem:[#allocation9 + $0x5c0] sm:$0xff] }
 0x127   :  { %1076 = vmatpush1.msra.mxu0 %v915_v4  ;;  %999 = vmatpush1.msra.mxu1 %v819_v5  ;;  %v871_v4 = vld [vmem:[#allocation9 + $0x2c0] sm:$0xff]  ;;  %v966_v5 = vld [vmem:[#allocation9 + $0x5b8] sm:$0xff] }
 0x128   :  { %1077 = vmatprep.subr.mxu0 %v913_v6  ;;  %1000 = vmatprep.subr.mxu1 %v817_v7  ;;  %v870_v6 = vld [vmem:[#allocation9 + $0x2b8] sm:$0xff]  ;;  %v964_v7 = vld [vmem:[#allocation9 + $0x5a8] sm:$0xff] }
 0x129   :  { %1078 = vmatpush1.msra.mxu0 %v912_v8  ;;  %1001 = vmatpush1.msra.mxu1 %v816_v9  ;;  %v868_v8 = vld [vmem:[#allocation9 + $0x2a8] sm:$0xff]  ;;  %v963_v9 = vld [vmem:[#allocation9 + $0x5a0] sm:$0xff] }
 0x12a   :  { %1079 = vmatprep.subr.mxu0 %v910_v10  ;;  %1002 = vmatprep.subr.mxu1 %v814_v11  ;;  %v867_v10 = vld [vmem:[#allocation9 + $0x2a0] sm:$0xff]  ;;  %v961_v11 = vld [vmem:[#allocation9 + $0x590] sm:$0xff] }
 0x12b   :  { %1080 = vmatpush1.msra.mxu0 %v909_v12  ;;  %1003 = vmatpush1.msra.mxu1 %v813_v13  ;;  %v865_v12 = vld [vmem:[#allocation9 + $0x290] sm:$0xff]  ;;  %v960_v13 = vld [vmem:[#allocation9 + $0x588] sm:$0xff] }
 0x12c   :  { %1081 = vmatprep.subr.mxu0 %v907_v14  ;;  %1004 = vmatprep.subr.mxu1 %v811_v15  ;;  %v864_v14 = vld [vmem:[#allocation9 + $0x288] sm:$0xff]  ;;  %v958_v15 = vld [vmem:[#allocation9 + $0x578] sm:$0xff] }
 0x12d   :  { %1082 = vmatpush1.msra.mxu0 %v906_v16  ;;  %1005 = vmatpush1.msra.mxu1 %v810_v17  ;;  %v862_v16 = vld [vmem:[#allocation9 + $0x278] sm:$0xff]  ;;  %v957_v17 = vld [vmem:[#allocation9 + $0x570] sm:$0xff] }
 0x12e   :  { %1083 = vmatprep.subr.mxu0 %v904_v18  ;;  %1006 = vmatprep.subr.mxu1 %v808_v19  ;;  %v861_v18 = vld [vmem:[#allocation9 + $0x270] sm:$0xff]  ;;  %v955_v19 = vld [vmem:[#allocation9 + $0x560] sm:$0xff] }
 0x12f   :  { %1084 = vmatpush1.msra.mxu0 %v903_v20  ;;  %1007 = vmatpush1.msra.mxu1 %v807_v21  ;;  %v859_v20 = vld [vmem:[#allocation9 + $0x260] sm:$0xff]  ;;  %v954_v21 = vld [vmem:[#allocation9 + $0x558] sm:$0xff] }
 0x130   :  { %1085 = vmatprep.subr.mxu0 %v901_v22  ;;  %1008 = vmatprep.subr.mxu1 %v805_v23  ;;  %v858_v22 = vld [vmem:[#allocation9 + $0x258] sm:$0xff]  ;;  %v952_v23 = vld [vmem:[#allocation9 + $0x548] sm:$0xff] }
 0x131   :  { %1086 = vmatpush1.msra.mxu0 %v900_v24  ;;  %1009 = vmatpush1.msra.mxu1 %v804_v25  ;;  %v856_v24 = vld [vmem:[#allocation9 + $0x248] sm:$0xff]  ;;  %v951_v25 = vld [vmem:[#allocation9 + $0x540] sm:$0xff] }
 0x132   :  { %1087 = vmatprep.subr.mxu0 %v898_v26  ;;  %1010 = vmatprep.subr.mxu1 %v802_v27  ;;  %v855_v26 = vld [vmem:[#allocation9 + $0x240] sm:$0xff]  ;;  %v949_v27 = vld [vmem:[#allocation9 + $0x530] sm:$0xff] }
 0x133   :  { %1088 = vmatpush1.msra.mxu0 %v897_v28  ;;  %1011 = vmatpush1.msra.mxu1 %v801_v29  ;;  %v853_v28 = vld [vmem:[#allocation9 + $0x230] sm:$0xff]  ;;  %v948_v29 = vld [vmem:[#allocation9 + $0x528] sm:$0xff] }
 0x134   :  { %1089 = vmatprep.subr.mxu0 %v895_v30  ;;  %1012 = vmatprep.subr.mxu1 %v799_v31  ;;  %v852_v30 = vld [vmem:[#allocation9 + $0x228] sm:$0xff]  ;;  %v946_v31 = vld [vmem:[#allocation9 + $0x518] sm:$0xff] }
 0x135   :  { %1090 = vmatpush1.msra.mxu0 %v894_v32  ;;  %1013 = vmatpush1.msra.mxu1 %v798_v33  ;;  %v850_v32 = vld [vmem:[#allocation9 + $0x218] sm:$0xff]  ;;  %v945_v33 = vld [vmem:[#allocation9 + $0x510] sm:$0xff] }
 0x136   :  { %1091 = vmatprep.subr.mxu0 %v892_v34  ;;  %1014 = vmatprep.subr.mxu1 %v796_v35  ;;  %v849_v34 = vld [vmem:[#allocation9 + $0x210] sm:$0xff]  ;;  %v943_v35 = vld [vmem:[#allocation9 + $0x500] sm:$0xff] }
 0x137   :  { %1092 = vmatpush1.msra.mxu0 %v891_v36  ;;  %1015 = vmatpush1.msra.mxu1 %v795_v37  ;;  %v847_v36 = vld [vmem:[#allocation9 + $0x200] sm:$0xff]  ;;  %v942_v37 = vld [vmem:[#allocation9 + $0x4f8] sm:$0xff] }
 0x138   :  { %1093 = vmatprep.subr.mxu0 %v889_v38  ;;  %1016 = vmatprep.subr.mxu1 %v793_v39  ;;  %v846_v38 = vld [vmem:[#allocation9 + $0x1f8] sm:$0xff]  ;;  %v940_v39 = vld [vmem:[#allocation9 + $0x4e8] sm:$0xff] }
 0x139   :  { %1094 = vmatpush1.msra.mxu0 %v888_v40  ;;  %1017 = vmatpush1.msra.mxu1 %v792_v41  ;;  %v844_v40 = vld [vmem:[#allocation9 + $0x1e8] sm:$0xff]  ;;  %v939_v41 = vld [vmem:[#allocation9 + $0x4e0] sm:$0xff] }
 0x13a   :  { %1095 = vmatprep.subr.mxu0 %v886_v42  ;;  %1018 = vmatprep.subr.mxu1 %v790_v43  ;;  %v843_v42 = vld [vmem:[#allocation9 + $0x1e0] sm:$0xff]  ;;  %v937_v43 = vld [vmem:[#allocation9 + $0x4d0] sm:$0xff] }
 0x13b   :  { %1096 = vmatpush1.msra.mxu0 %v885_v44  ;;  %1019 = vmatpush1.msra.mxu1 %v789_v45  ;;  %v841_v44 = vld [vmem:[#allocation9 + $0x1d0] sm:$0xff]  ;;  %v936_v45 = vld [vmem:[#allocation9 + $0x4c8] sm:$0xff] }
 0x13c   :  { %1097 = vmatprep.subr.mxu0 %v883_v50  ;;  %1020 = vmatprep.subr.mxu1 %v787_v52  ;;  %v840_v50 = vld [vmem:[#allocation9 + $0x1c8] sm:$0xff]  ;;  %v934_v52 = vld [vmem:[#allocation9 + $0x4b8] sm:$0xff] }
 0x13d   :  { %1098 = vmatpush1.msra.mxu0 %v882_v53  ;;  %1021 = vmatpush1.msra.mxu1 %v786_v54  ;;  %v838_v53 = vld [vmem:[#allocation9 + $0x1b8] sm:$0xff]  ;;  %v933_v54 = vld [vmem:[#allocation9 + $0x4b0] sm:$0xff] }
 0x13e   :  { %1099 = vmatprep.subr.mxu0 %v880_v55  ;;  %1022 = vmatprep.subr.mxu1 %v784_v56  ;;  %v837_v55 = vld [vmem:[#allocation9 + $0x1b0] sm:$0xff]  ;;  %v931_v56 = vld [vmem:[#allocation9 + $0x4a0] sm:$0xff] }
 0x13f   :  { %1100 = vmatpush1.msra.mxu0 %v879_v57  ;;  %1023 = vmatpush1.msra.mxu1 %v783_v58  ;;  %v835_v57 = vld [vmem:[#allocation9 + $0x1a0] sm:$0xff]  ;;  %v930_v58 = vld [vmem:[#allocation9 + $0x498] sm:$0xff] }
 0x140   :  { %1101 = vmatprep.subr.mxu0 %v973_v59  ;;  %1024 = vmatprep.subr.mxu1 %v877_v60  ;;  %v834_v59 = vld [vmem:[#allocation9 + $0x198] sm:$0xff]  ;;  %v928_v60 = vld [vmem:[#allocation9 + $0x488] sm:$0xff] }
 0x141   :  { %1102 = vmatpush2.msra.mxu0 %v972_v61  ;;  %1025 = vmatpush2.msra.mxu1 %v876_v62  ;;  %v832_v61 = vld [vmem:[#allocation9 + $0x188] sm:$0xff]  ;;  %v927_v62 = vld [vmem:[#allocation9 + $0x480] sm:$0xff] }
 0x142   :  { %1103 = vmatprep.subr.mxu0 %v970_v63  ;;  %1026 = vmatprep.subr.mxu1 %v874_v1  ;;  %v831_v63 = vld [vmem:[#allocation9 + $0x180] sm:$0xff]  ;;  %v974_v1 = vld [vmem:[#allocation9 + $0x5f8] sm:$0xff] }
 0x143   :  { %1104 = vmatpush2.msra.mxu0 %v969_v2  ;;  %1027 = vmatpush2.msra.mxu1 %v873_v0  ;;  %v878_v2 = vld [vmem:[#allocation9 + $0x2f8] sm:$0xff]  ;;  %v597_v0 = vld [vmem:[%s1783_s4] sm:$0x3] }
 0x144   :  { %1105 = vmatprep.subr.mxu0 %v967_v3  ;;  %1028 = vmatprep.subr.mxu1 %v871_v4  ;;  %v602_v3 = vrot.slane %v597_v0, %v1687_v51  ;;  %v606_v4 = vrot.slane %v597_v0, %v1682_v47  ;;  %v902_v0 = vld [vmem:[#allocation9 + $0x3b8] sm:$0xff] }
 0x145   :  { %1106 = vmatpush2.msra.mxu0 %v966_v5  ;;  %1029 = vmatpush2.msra.mxu1 %v870_v6 }
 0x146   :  { %1107 = vmatprep.subr.mxu0 %v964_v7  ;;  %1030 = vmatprep.subr.mxu1 %v868_v8 }
 0x147   :  { %1108 = vmatpush2.msra.mxu0 %v963_v9  ;;  %1031 = vmatpush2.msra.mxu1 %v867_v10 }
 0x148   :  { %1109 = vmatprep.subr.mxu0 %v961_v11  ;;  %1032 = vmatprep.subr.mxu1 %v865_v12 }
 0x149   :  { %1110 = vmatpush2.msra.mxu0 %v960_v13  ;;  %1033 = vmatpush2.msra.mxu1 %v864_v14 }
 0x14a   :  { %1111 = vmatprep.subr.mxu0 %v958_v15  ;;  %1034 = vmatprep.subr.mxu1 %v862_v16 }
 0x14b   :  { %1112 = vmatpush2.msra.mxu0 %v957_v17  ;;  %1035 = vmatpush2.msra.mxu1 %v861_v18 }
 0x14c   :  { %1113 = vmatprep.subr.mxu0 %v955_v19  ;;  %1036 = vmatprep.subr.mxu1 %v859_v20 }
 0x14d   :  { %1114 = vmatpush2.msra.mxu0 %v954_v21  ;;  %1037 = vmatpush2.msra.mxu1 %v858_v22 }
 0x14e   :  { %1115 = vmatprep.subr.mxu0 %v952_v23  ;;  %1038 = vmatprep.subr.mxu1 %v856_v24  ;;  %v926_v23 = vld [vmem:[#allocation9 + $0x478] sm:$0xff] }
 0x14f   :  { %1116 = vmatpush2.msra.mxu0 %v951_v25  ;;  %1039 = vmatpush2.msra.mxu1 %v855_v26 }
 0x150   :  { %1117 = vmatprep.subr.mxu0 %v949_v27  ;;  %1040 = vmatprep.subr.mxu1 %v853_v28  ;;  %v830_v27 = vld [vmem:[#allocation9 + $0x178] sm:$0xff]  ;;  %v971_v28 = vld [vmem:[#allocation9 + $0x5e0] sm:$0xff] }
 0x151   :  { %1118 = vmatpush2.msra.mxu0 %v948_v29  ;;  %1041 = vmatpush2.msra.mxu1 %v852_v30  ;;  %v875_v29 = vld [vmem:[#allocation9 + $0x2e0] sm:$0xff] }
 0x152   :  { %1119 = vmatprep.subr.mxu0 %v946_v31  ;;  %1042 = vmatprep.subr.mxu1 %v850_v32  ;;  %v923_v32 = vld [vmem:[#allocation9 + $0x460] sm:$0xff] }
 0x153   :  { %1120 = vmatpush2.msra.mxu0 %v945_v33  ;;  %1043 = vmatpush2.msra.mxu1 %v849_v34  ;;  %v827_v33 = vld [vmem:[#allocation9 + $0x160] sm:$0xff]  ;;  %v968_v34 = vld [vmem:[#allocation9 + $0x5c8] sm:$0xff] }
 0x154   :  { %1121 = vmatprep.subr.mxu0 %v943_v35  ;;  %1044 = vmatprep.subr.mxu1 %v847_v36  ;;  %v872_v36 = vld [vmem:[#allocation9 + $0x2c8] sm:$0xff] }
 0x155   :  { %1122 = vmatpush2.msra.mxu0 %v942_v37  ;;  %1045 = vmatpush2.msra.mxu1 %v846_v38  ;;  %v920_v37 = vld [vmem:[#allocation9 + $0x448] sm:$0xff] }
 0x156   :  { %1123 = vmatprep.subr.mxu0 %v940_v39  ;;  %1046 = vmatprep.subr.mxu1 %v844_v40  ;;  %v824_v38 = vld [vmem:[#allocation9 + $0x148] sm:$0xff]  ;;  %v965_v39 = vld [vmem:[#allocation9 + $0x5b0] sm:$0xff] }
 0x157   :  { %1124 = vmatpush2.msra.mxu0 %v939_v41  ;;  %1047 = vmatpush2.msra.mxu1 %v843_v42  ;;  %v869_v40 = vld [vmem:[#allocation9 + $0x2b0] sm:$0xff] }
 0x158   :  { %1125 = vmatprep.subr.mxu0 %v937_v43  ;;  %1048 = vmatprep.subr.mxu1 %v841_v44  ;;  %v917_v41 = vld [vmem:[#allocation9 + $0x430] sm:$0xff]  ;;  %v962_v43 = vld [vmem:[#allocation9 + $0x598] sm:$0xff] }
 0x159   :  { %1126 = vmatpush2.msra.mxu0 %v936_v45  ;;  %1049 = vmatpush2.msra.mxu1 %v840_v50  ;;  %v821_v42 = vld [vmem:[#allocation9 + $0x130] sm:$0xff]  ;;  %v866_v44 = vld [vmem:[#allocation9 + $0x298] sm:$0xff] }
 0x15a   :  { %1127 = vmatprep.subr.mxu0 %v934_v52  ;;  %1050 = vmatprep.subr.mxu1 %v838_v53  ;;  %v914_v45 = vld [vmem:[#allocation9 + $0x418] sm:$0xff]  ;;  %v959_v52 = vld [vmem:[#allocation9 + $0x580] sm:$0xff] }
 0x15b   :  { %1128 = vmatpush2.msra.mxu0 %v933_v54  ;;  %1051 = vmatpush2.msra.mxu1 %v837_v55  ;;  %v818_v50 = vld [vmem:[#allocation9 + $0x118] sm:$0xff]  ;;  %v863_v53 = vld [vmem:[#allocation9 + $0x280] sm:$0xff] }
 0x15c   :  { %1129 = vmatprep.subr.mxu0 %v931_v56  ;;  %1052 = vmatprep.subr.mxu1 %v835_v57  ;;  %v911_v54 = vld [vmem:[#allocation9 + $0x400] sm:$0xff]  ;;  %v956_v56 = vld [vmem:[#allocation9 + $0x568] sm:$0xff] }
 0x15d   :  { %1130 = vmatpush2.msra.mxu0 %v930_v58  ;;  %1053 = vmatpush2.msra.mxu1 %v834_v59  ;;  %v815_v55 = vld [vmem:[#allocation9 + $0x100] sm:$0xff]  ;;  %v860_v57 = vld [vmem:[#allocation9 + $0x268] sm:$0xff] }
 0x15e   :  { %1131 = vmatprep.subr.mxu0 %v928_v60  ;;  %1054 = vmatprep.subr.mxu1 %v832_v61  ;;  %v908_v58 = vld [vmem:[#allocation9 + $0x3e8] sm:$0xff]  ;;  %v953_v60 = vld [vmem:[#allocation9 + $0x550] sm:$0xff] }
 0x15f   :  { %1132 = vmatpush2.msra.mxu0 %v927_v62  ;;  %1055 = vmatpush2.msra.mxu1 %v831_v63  ;;  %v812_v59 = vld [vmem:[#allocation9 + $0xe8] sm:$0xff]  ;;  %v857_v61 = vld [vmem:[#allocation9 + $0x250] sm:$0xff] }
 0x160   :  { %1423 = vmatprep.subr.mxu0 %v974_v1  ;;  %1385 = vmatprep.subr.mxu1 %v878_v2  ;;  %v905_v62 = vld [vmem:[#allocation9 + $0x3d0] sm:$0xff]  ;;  %v950_v1 = vld [vmem:[#allocation9 + $0x538] sm:$0xff] }
 0x161   :  { %v809_v63 = vld [vmem:[#allocation9 + $0xd0] sm:$0xff]  ;;  %v854_v2 = vld [vmem:[#allocation9 + $0x238] sm:$0xff] }
 0x1de   :  { %v675_v5 = vpop.f32.mrf.mxu0  ;;  %v752_v6 = vpop.f32.mrf.mxu1 }
 0x1df   :  { %v676_v7 = vadd.f32 %v675_v5, %v602_v3  ;;  %v851_v5 = vld [vmem:[#allocation9 + $0x220] sm:$0xff] }
 0x1e0   :  { %v677_v8 = vpop.f32.mrf.mxu0  ;;  %v754_v9 = vpop.f32.mrf.mxu1 }
 0x1e1   :  { %v753_v10 = vadd.f32 %v752_v6, %v676_v7  ;;  %v678_v11 = vadd.f32 %v677_v8, %v606_v4  ;;  %v899_v6 = vld [vmem:[#allocation9 + $0x3a0] sm:$0xff]  ;;  %v944_v8 = vld [vmem:[#allocation9 + $0x508] sm:$0xff] }
 0x1e2   :  { %v681_v12 = vpop.f32.mrf.mxu0  ;;  %v758_v13 = vpop.f32.mrf.mxu1  ;;  %v803_v7 = vld [vmem:[#allocation9 + $0xa0] sm:$0xff] }
 0x1e3   :  { %v763_v14 = vmax.f32 %v753_v10, 0.0  ;;  %v755_v15 = vadd.f32 %v754_v9, %v678_v11  ;;  %v682_v16 = vadd.f32 %v681_v12, %v602_v3  ;;  %v806_v3 = vld [vmem:[#allocation9 + $0xb8] sm:$0xff]  ;;  %v848_v9 = vld [vmem:[#allocation9 + $0x208] sm:$0xff]  ;;  %v941_v12 = vld [vmem:[#allocation9 + $0x4f0] sm:$0xff] }
 0x1e4   :  { %v683_v17 = vpop.f32.mrf.mxu0  ;;  %v760_v22 = vpop.f32.mrf.mxu1  ;;  %v896_v10 = vld [vmem:[#allocation9 + $0x388] sm:$0xff] }
 0x1e5   :  { %v777_v18 = vrot.slane %v763_v14, 1  ;;  %v1715_v19 = vmax.f32 %v755_v15, 0.0  ;;  %v759_v20 = vadd.f32 %v758_v13, %v682_v16  ;;  %v684_v21 = vadd.f32 %v683_v17, %v606_v4  ;;  %1056 = vmatprep.mubr.f32.mxu1 %v763_v14  ;;  %v947_v4 = vld [vmem:[#allocation9 + $0x520] sm:$0xff]  ;;  %v800_v11 = vld [vmem:[#allocation9 + $0x88] sm:$0xff]  ;;  %v845_v13 = vld [vmem:[#allocation9 + $0x1f0] sm:$0xff] }
 0x1e6   :  { %v797_v15 = vld [vmem:[#allocation9 + $0x70] sm:$0xff]  ;;  %v938_v16 = vld [vmem:[#allocation9 + $0x4d8] sm:$0xff] }
 0x1e7   :  { %v769_v24 = vrot.slane %v1715_v19, 7  ;;  %v1718_v25 = vmax.f32 %v759_v20, 0.0  ;;  %v761_v26 = vadd.f32 %v760_v22, %v684_v21  ;;  %1377 = vmatprep.mubr.msk.f32.mxu0 %vm498_vm3, %v777_v18  ;;  %v842_v17 = vld [vmem:[#allocation9 + $0x1d8] sm:$0xff]  ;;  %v935_v21 = vld [vmem:[#allocation9 + $0x4c0] sm:$0xff] }
 0x1e8   :  { %1134 = vmatmul.mubr.f32.vlgmr.msra.gmra.mxu0 %v1715_v19  ;;  %v794_v20 = vld [vmem:[#allocation9 + $0x58] sm:$0xff]  ;;  %v839_v22 = vld [vmem:[#allocation9 + $0x1c0] sm:$0xff] }
 0x1e9   :  { %v778_v30 = vrot.slane %v1718_v25, 1  ;;  %v1723_v31 = vmax.f32 %v761_v26, 0.0  ;;  %1424 = vmatpush3.msra.mxu0 %v926_v23  ;;  %1374 = vmatmul.mubr.msk.f32.vlgmr.msra.gmra.mxu1 %vm1699_vm2, %v769_v24  ;;  %v887_v23 = vld [vmem:[#allocation9 + $0x340] sm:$0xff] }
 0x1ea   :  { %1386 = vmatpush3.msra.mxu1 %v830_v27  ;;  %1425 = vmatprep.subr.mxu0 %v971_v28  ;;  %v791_v26 = vld [vmem:[#allocation9 + $0x40] sm:$0xff]  ;;  %v932_v27 = vld [vmem:[#allocation9 + $0x4a8] sm:$0xff] }
 0x1eb   :  { %v770_v35 = vrot.slane %v1723_v31, 7  ;;  %1062 = vmatprep.mubr.f32.mxu1 %v1718_v25  ;;  %1387 = vmatprep.subr.mxu1 %v875_v29  ;;  %v836_v28 = vld [vmem:[#allocation9 + $0x1a8] sm:$0xff] }
 0x1ec   :  { %1426 = vmatpush3.msra.mxu0 %v923_v32  ;;  %1378 = vmatprep.mubr.msk.f32.mxu0 %vm498_vm3, %v778_v30  ;;  %v884_v29 = vld [vmem:[#allocation9 + $0x328] sm:$0xff] }
 0x1ed   :  { %1388 = vmatpush3.msra.mxu1 %v827_v33  ;;  %1427 = vmatprep.subr.mxu0 %v968_v34  ;;  %v788_v32 = vld [vmem:[#allocation9 + $0x28] sm:$0xff]  ;;  %v929_v33 = vld [vmem:[#allocation9 + $0x490] sm:$0xff] }
 0x1ee   :  { %1140 = vmatmul.mubr.f32.gmra.mxu0 %v1723_v31  ;;  %1389 = vmatprep.subr.mxu1 %v872_v36  ;;  %v833_v34 = vld [vmem:[#allocation9 + $0x190] sm:$0xff] }
 0x1ef   :  { %1428 = vmatpush3.msra.mxu0 %v920_v37  ;;  %1376 = vmatmul.mubr.msk.f32.gmra.mxu1 %vm1699_vm2, %v770_v35  ;;  %v881_v36 = vld [vmem:[#allocation9 + $0x310] sm:$0xff] }
 0x1f0   :  { %1390 = vmatpush3.msra.mxu1 %v824_v38  ;;  %1429 = vmatprep.subr.mxu0 %v965_v39  ;;  %v785_v37 = vld [vmem:[#allocation9 + $0x10] sm:$0xff] }
 0x1f1   :  { %1383 = vmatprep.mubr.msk.f32.mxu0 %vm498_vm3, %v777_v18  ;;  %1391 = vmatprep.subr.mxu1 %v869_v40  ;;  %v890_v18 = vld [vmem:[#allocation9 + $0x358] sm:$0xff] }
 0x1f2   :  { %1210 = vmatprep.mubr.f32.mxu1 %v763_v14  ;;  %1430 = vmatpush3.msra.mxu0 %v917_v41  ;;  %v893_v14 = vld [vmem:[#allocation9 + $0x370] sm:$0xff] }
 0x1f3   :  { %1392 = vmatpush3.msra.mxu1 %v821_v42  ;;  %1431 = vmatprep.subr.mxu0 %v962_v43 }
 0x1f4   :  { %1393 = vmatprep.subr.mxu1 %v866_v44  ;;  %1432 = vmatpush3.msra.mxu0 %v914_v45 }
 0x1f5   :  { %1394 = vmatpush3.msra.mxu1 %v818_v50  ;;  %1433 = vmatprep.subr.mxu0 %v959_v52 }
 0x1f6   :  { %1395 = vmatprep.subr.mxu1 %v863_v53  ;;  %1434 = vmatpush3.msra.mxu0 %v911_v54 }
 0x1f7   :  { %1396 = vmatpush3.msra.mxu1 %v815_v55  ;;  %1435 = vmatprep.subr.mxu0 %v956_v56 }
 0x1f8   :  { %1397 = vmatprep.subr.mxu1 %v860_v57  ;;  %1436 = vmatpush3.msra.mxu0 %v908_v58 }
 0x1f9   :  { %1398 = vmatpush3.msra.mxu1 %v812_v59  ;;  %1437 = vmatprep.subr.mxu0 %v953_v60 }
 0x1fa   :  { %1399 = vmatprep.subr.mxu1 %v857_v61  ;;  %1438 = vmatpush3.msra.mxu0 %v905_v62 }
 0x1fb   :  { %1400 = vmatpush3.msra.mxu1 %v809_v63  ;;  %1439 = vmatprep.subr.mxu0 %v950_v1 }
 0x1fc   :  { %1401 = vmatprep.subr.mxu1 %v854_v2  ;;  %1440 = vmatpush3.msra.mxu0 %v902_v0 }
 0x1fd   :  { %1402 = vmatpush3.msra.mxu1 %v806_v3  ;;  %1441 = vmatprep.subr.mxu0 %v947_v4 }
 0x1fe   :  { %1403 = vmatprep.subr.mxu1 %v851_v5  ;;  %1442 = vmatpush3.msra.mxu0 %v899_v6 }
 0x1ff   :  { %1404 = vmatpush3.msra.mxu1 %v803_v7  ;;  %1443 = vmatprep.subr.mxu0 %v944_v8 }
 0x200   :  { %1405 = vmatprep.subr.mxu1 %v848_v9  ;;  %1444 = vmatpush3.msra.mxu0 %v896_v10 }
 0x201   :  { %1406 = vmatpush3.msra.mxu1 %v800_v11  ;;  %1445 = vmatprep.subr.mxu0 %v941_v12 }
 0x202   :  { %1407 = vmatprep.subr.mxu1 %v845_v13  ;;  %1446 = vmatpush3.msra.mxu0 %v893_v14 }
 0x203   :  { %1408 = vmatpush3.msra.mxu1 %v797_v15  ;;  %1447 = vmatprep.subr.mxu0 %v938_v16 }
 0x204   :  { %1409 = vmatprep.subr.mxu1 %v842_v17  ;;  %1448 = vmatpush3.msra.mxu0 %v890_v18 }
 0x205   :  { %1410 = vmatpush3.msra.mxu1 %v794_v20  ;;  %1449 = vmatprep.subr.mxu0 %v935_v21 }
 0x206   :  { %1411 = vmatprep.subr.mxu1 %v839_v22  ;;  %1450 = vmatpush3.msra.mxu0 %v887_v23 }
 0x207   :  { %1412 = vmatpush3.msra.mxu1 %v791_v26  ;;  %1451 = vmatprep.subr.mxu0 %v932_v27 }
 0x208   :  { %1413 = vmatprep.subr.mxu1 %v836_v28  ;;  %1452 = vmatpush3.msra.mxu0 %v884_v29 }
 0x209   :  { %1414 = vmatpush3.msra.mxu1 %v788_v32  ;;  %1453 = vmatprep.subr.mxu0 %v929_v33 }
 0x20a   :  { %1415 = vmatprep.subr.mxu1 %v833_v34  ;;  %1454 = vmatpush3.msra.mxu0 %v881_v36 }
 0x20b   :  { %1416 = vmatpush3.msra.mxu1 %v785_v37  ;;  %1286 = vmatmul.mubr.f32.vlgmr.msra.gmra.mxu0 %v1715_v19  ;;  %v975_v19 = vld [vmem:[%s1785_s6] sm:$0x7] }
 0x20c   :  { %1380 = vmatmul.mubr.msk.f32.vlgmr.msra.gmra.mxu1 %vm1699_vm2, %v769_v24  ;;  %1384 = vmatprep.mubr.msk.f32.mxu0 %vm498_vm3, %v778_v30  ;;  %v980_v38 = vrot.slane %v975_v19, %v1687_v51  ;;  %v984_v39 = vrot.slane %v975_v19, %v1682_v47  ;;  %v988_v12 = vrot.slane %v975_v19, %v109_v48 }
 0x20d   :  { %1215 = vmatprep.mubr.f32.mxu1 %v1718_v25 }
 0x20f   :  { %1291 = vmatmul.mubr.f32.gmra.mxu0 %v1723_v31 }
 0x210   :  { %1382 = vmatmul.mubr.msk.f32.gmra.mxu1 %vm1699_vm2, %v770_v35 }
 0x2a8   :  { %v1135_v24 = vpop.f32.mrf.mxu0 }
 0x2a9   :  { %v1058_v40 = vpop.f32.mrf.mxu1 }
 0x2aa   :  { %v1059_v30 = vadd.f32 %v1058_v40, %v980_v38  ;;  %v1137_v42 = vpop.f32.mrf.mxu0 }
 0x2ab   :  { %v1060_v41 = vpop.f32.mrf.mxu1 }
 0x2ac   :  { %v1136_v25 = vadd.f32 %v1135_v24, %v1059_v30  ;;  %v1061_v43 = vadd.f32 %v1060_v41, %v984_v39 }
 0x2ae   :  { %v1296_v44 = vand.u32 2147483647, %v1136_v25  ;;  %v1138_v31 = vadd.f32 %v1137_v42, %v1061_v43  ;;  %v1141_v50 = vpop.f32.mrf.mxu0  ;;  %vm1320_vm4 = vcmp.ge.f32.partialorder %v1136_v25, 0.0 }
 0x2af   :  { %v1064_v45 = vpop.f32.mrf.mxu1 }
 0x2b0   :  { %v1302_v49 = vsub.f32 0.0, %v1296_v44  ;;  %v1297_v35 = vand.u32 2147483647, %v1138_v31  ;;  %v1065_v52 = vadd.f32 %v1064_v45, %v980_v38  ;;  %v1143_v58 = vpop.f32.mrf.mxu0  ;;  %vm1321_vm5 = vcmp.ge.f32.partialorder %v1138_v31, 0.0 }
 0x2b1   :  { %v1066_v53 = vpop.f32.mrf.mxu1 }
 0x2b2   :  { %v1308_v54 = vmul.f32 1.442695, %v1302_v49  ;;  %v1303_v55 = vsub.f32 0.0, %v1297_v35  ;;  %v1142_v51 = vadd.f32 %v1141_v50, %v1065_v52  ;;  %v1067_v56 = vadd.f32 %v1066_v53, %v984_v39 }
 0x2b4   :  { %1473 = vpow2.f32 %v1308_v54  ;;  %v1310_v47 = vmul.f32 1.442695, %v1303_v55  ;;  %v1299_v57 = vand.u32 2147483647, %v1142_v51  ;;  %v1144_v59 = vadd.f32 %v1143_v58, %v1067_v56 }
 0x2b5   :  { %vm1323_vm6 = vcmp.ge.f32.partialorder %v1142_v51, 0.0 }
 0x2b6   :  { %1475 = vpow2.f32 %v1310_v47  ;;  %v1305_v60 = vsub.f32 0.0, %v1299_v57  ;;  %v1300_v61 = vand.u32 2147483647, %v1144_v59  ;;  %vm1324_vm7 = vcmp.ge.f32.partialorder %v1144_v59, 0.0 }
 0x2b8   :  { %v1314_v62 = vmul.f32 1.442695, %v1305_v60  ;;  %v1306_v63 = vsub.f32 0.0, %v1300_v61 }
 0x2ba   :  { %1477 = vpow2.f32 %v1314_v62  ;;  %v1316_v1 = vmul.f32 1.442695, %v1306_v63 }
 0x2bc   :  { %1479 = vpow2.f32 %v1316_v1 }
 0x2c1   :  { %v1474_v2 = vpop.eup %1473 }
 0x2c2   :  { %v1332_v0 = vadd.f32 1.0, %v1474_v2  ;;  %v1326_v18 = vsel %vm1320_vm4, 1.0, %v1474_v2 }
 0x2c3   :  { %v1476_v3 = vpop.eup %1475 }
 0x2c4   :  { %1481 = vrcp.f32 %v1332_v0  ;;  %v1333_v4 = vadd.f32 1.0, %v1476_v3  ;;  %v1327_v28 = vsel %vm1321_vm5, 1.0, %v1476_v3 }
 0x2c6   :  { %1483 = vrcp.f32 %v1333_v4 }
 0x2c7   :  { %v1478_v5 = vpop.eup %1477 }
 0x2c8   :  { %v1335_v6 = vadd.f32 1.0, %v1478_v5  ;;  %v1329_v37 = vsel %vm1323_vm6, 1.0, %v1478_v5 }
 0x2c9   :  { %v1480_v7 = vpop.eup %1479 }
 0x2ca   :  { %1485 = vrcp.f32 %v1335_v6  ;;  %v1336_v8 = vadd.f32 1.0, %v1480_v7  ;;  %v1330_v41 = vsel %vm1324_vm7, 1.0, %v1480_v7 }
 0x2cb   :  { %v1455_v9 = vpop.f32.mrf.mxu0 }
 0x2cc   :  { %v1417_v10 = vpop.f32.mrf.mxu1  ;;  %1487 = vrcp.f32 %v1336_v8 }
 0x2cd   :  { %v1456_v11 = vpop.f32.mrf.mxu0 }
 0x2ce   :  { %v1418_v13 = vpop.f32.mrf.mxu1  ;;  %v1457_v20 = vadd.f32 %v1456_v11, %v1455_v9 }
 0x2cf   :  { %v1419_v14 = vadd.f32 %v1418_v13, %v1417_v10  ;;  %v1458_v15 = vpop.f32.mrf.mxu0 }
 0x2d0   :  { %v1420_v16 = vpop.f32.mrf.mxu1 }
 0x2d1   :  { %v1482_v17 = vpop.eup %1481  ;;  %v1213_v21 = vadd.f32 %v1419_v14, %v988_v12  ;;  %v1459_v23 = vpop.f32.mrf.mxu0 }
 0x2d2   :  { %v1344_v22 = vmul.f32 %v1482_v17, %v1326_v18  ;;  %v1421_v26 = vpop.f32.mrf.mxu1  ;;  %v1460_v33 = vadd.f32 %v1459_v23, %v1458_v15 }
 0x2d3   :  { %v1484_v27 = vpop.eup %1483  ;;  %v1288_v29 = vadd.f32 %v1457_v20, %v1213_v21  ;;  %v1422_v32 = vadd.f32 %v1421_v26, %v1420_v16 }
 0x2d4   :  { %1350 = vst [vmem:[%s1786_s7] sm:$0xff] %v1344_v22  ;;  %v1345_v46 = vmul.f32 %v1484_v27, %v1327_v28 }
 0x2d5   :  { %v1298_v48 = vand.u32 2147483647, %v1288_v29  ;;  %v1218_v34 = vadd.f32 %v1422_v32, %v988_v12  ;;  %vm1322_vm8 = vcmp.ge.f32.partialorder %v1288_v29, 0.0 }
 0x2d6   :  { %1351 = vst [vmem:[%s1786_s7 + $0x8] sm:$0xff] %v1345_v46 }
 0x2d7   :  { %v1486_v36 = vpop.eup %1485  ;;  %v1304_v19 = vsub.f32 0.0, %v1298_v48  ;;  %v1293_v38 = vadd.f32 %v1460_v33, %v1218_v34 }
 0x2d8   :  { %v1347_v24 = vmul.f32 %v1486_v36, %v1329_v37 }
 0x2d9   :  { %v1312_v39 = vmul.f32 1.442695, %v1304_v19  ;;  %v1301_v40 = vand.u32 2147483647, %v1293_v38  ;;  %v1488_v30 = vpop.eup %1487  ;;  %vm1325_vm9 = vcmp.ge.f32.partialorder %v1293_v38, 0.0 }
 0x2da   :  { %1353 = vst [vmem:[%s1786_s7 + $0x18] sm:$0xff] %v1347_v24  ;;  %v1348_v25 = vmul.f32 %v1488_v30, %v1330_v41 }
 0x2db   :  { %1489 = vpow2.f32 %v1312_v39  ;;  %v1307_v42 = vsub.f32 0.0, %v1301_v40 }
 0x2dc   :  { %1354 = vst [vmem:[%s1786_s7 + $0x20] sm:$0xff] %v1348_v25 }
 0x2dd   :  { %v1318_v43 = vmul.f32 1.442695, %v1307_v42 }
 0x2df   :  { %1491 = vpow2.f32 %v1318_v43 }
 0x2e8   :  { %v1490_v44 = vpop.eup %1489 }
 0x2e9   :  { %v1334_v31 = vadd.f32 1.0, %v1490_v44  ;;  %v1328_v50 = vsel %vm1322_vm8, 1.0, %v1490_v44 }
 0x2eb   :  { %1493 = vrcp.f32 %v1334_v31 }
 0x2ec   :  { %v1492_v45 = vpop.eup %1491 }
 0x2ed   :  { %v1337_v49 = vadd.f32 1.0, %v1492_v45  ;;  %v1331_v54 = vsel %vm1325_vm9, 1.0, %v1492_v45 }
 0x2ef   :  { %1495 = vrcp.f32 %v1337_v49 }
 0x2f8   :  { %v1494_v35 = vpop.eup %1493 }
 0x2f9   :  { %v1346_v52 = vmul.f32 %v1494_v35, %v1328_v50 }
 0x2fb   :  { %1352 = vst [vmem:[%s1786_s7 + $0x10] sm:$0xff] %v1346_v52 }
 0x2fc   :  { %v1496_v53 = vpop.eup %1495 }
 0x2fd   :  { %v1349_v55 = vmul.f32 %v1496_v53, %v1331_v54 }
 0x2ff   :  { %1355 = vst [vmem:[%s1786_s7 + $0x28] sm:$0xff] %v1349_v55 }
 0x300   :  { %1360 = vsyncpa [#allocation3], 1 }
 0x301   :  { %1361 = vsyncpa [#allocation5], 1 }
 0x302   :  { %1362 = vsyncpa [#allocation8], 1 }

</bundles_post_ra>
